<compile_context>
chip_gen: v6e
topology: v6e:2x2x1
jax: 0.10.0
libtpu: 0.0.40
codegen_flags: <defaults>
</compile_context>

<pallas_src>
import functools

import jax
import jax.numpy as jnp
import numpy as np
from jax.experimental import pallas as pl
from jax.experimental.pallas import tpu as pltpu


# --------------------------- Fused forward kernel -----------------------------
def _fused_electric_lstm_kernel(num_layers, hidden_size, batch, x_ref, *refs):
    """Entire forward (num_layers LSTM layers + final Linear) in one invocation.

    refs = (w_x_0, w_h_0, b_0, ..., w_x_{L-1}, w_h_{L-1}, b_{L-1},
            w_fc_t, b_fc, out_ref, hseq_scratch)
      w_x_l : (D_in_l, 4H)  bf16     w_h_l : (H, 4H)  bf16     b_l : (1, 4H)  f32
      w_fc_t: (H, O) bf16            b_fc  : (1, O)  f32
    x_ref  : (T*B, D_in) time-major flattened input (f32).
    Gate order i, f, g, o (PyTorch).
    """
    hseq_ref = refs[-1]            # VMEM scratch (T*B, H): inter-layer hidden sequence
    out_ref = refs[-2]
    b_fc_ref = refs[-3]
    w_fc_ref = refs[-4]
    H, B = hidden_size, batch
    T = x_ref.shape[0] // B
    last = num_layers - 1

    layer_in = x_ref[...].astype(jnp.float32)         # (T*B, D_in)
    h = None
    for l in range(num_layers):
        w_x = refs[3 * l][...]        # (D_in, 4H) bf16
        w_h = refs[3 * l + 1][...]    # (H, 4H)    bf16
        b = refs[3 * l + 2][...]      # (1, 4H)    f32

        # Hoisted, non-recurrent input projection + bias: one big MXU matmul per
        # layer instead of T tiny concat+matmuls, bias broadcast done once.
        x_proj = jnp.dot(layer_in.astype(jnp.bfloat16), w_x,
                         preferred_element_type=jnp.float32) + b       # (T*B, 4H) f32

        h = jnp.zeros((B, H), jnp.float32)
        c = jnp.zeros((B, H), jnp.float32)
        # Static fully-unrolled recurrence; only (h, c) are live across steps
        # (per-step hidden goes straight to the VMEM scratch).
        # TODO(synk): stage w_h in the MXU across steps via pltpu.matmul_push_rhs /
        # matmul_acc_lhs / matmul_pop if per-step MXU issue latency becomes binding.
        for t in range(T):
            gates = (jnp.dot(h.astype(jnp.bfloat16), w_h,
                             preferred_element_type=jnp.float32)
                     + x_proj[t * B:(t + 1) * B, :])                    # (B, 4H)
            sig = jax.nn.sigmoid(gates)                # i / f / o quarters
            i_g = sig[:, 0 * H:1 * H]
            f_g = sig[:, 1 * H:2 * H]
            o_g = sig[:, 3 * H:4 * H]
            g_g = jnp.tanh(gates[:, 2 * H:3 * H])      # only g-quarter needs tanh
            c = f_g * c + i_g * g_g
            h = o_g * jnp.tanh(c)
            if l < last:
                hseq_ref[t * B:(t + 1) * B, :] = h
        if l < last:
            layer_in = hseq_ref[...]                   # feeds the next layer (VMEM)

    # Final Linear on the last time step of the top layer.
    y = (jnp.dot(h.astype(jnp.bfloat16), w_fc_ref[...],
                 preferred_element_type=jnp.float32) + b_fc_ref[...])
    out_ref[...] = y.astype(out_ref.dtype)


# ------------------------------- Wrapper ---------------------------------------
def _padded_vmem_bytes(shape, dtype):
    """(sublane,128)-tile-aware VMEM footprint (f32: 8 sublanes, bf16: 16)."""
    itemsize = jnp.dtype(dtype).itemsize
    sub = {4: 8, 2: 16, 1: 32}.get(itemsize, 8)
    shape = tuple(int(s) for s in shape)
    if len(shape) == 0:
        shape = (1, 1)
    elif len(shape) == 1:
        shape = (1, shape[0])
    lead = int(np.prod(shape[:-2])) if len(shape) > 2 else 1
    rows = -(-shape[-2] // sub) * sub
    cols = -(-shape[-1] // 128) * 128
    return lead * rows * cols * itemsize


def electric_lstm_forward(params, x_btd):
    """x_btd: (B, T, input_size), batch_first like PyTorch.  Returns squeezed fc output."""
    B, T, D = x_btd.shape
    H, O = params["w_fc_t"].shape
    num_layers = len(params["layers"])

    # Time-major flatten (one cheap one-time XLA transpose outside the kernel) so the
    # per-layer input projection is a single batched matmul and every per-step gate
    # addend is a contiguous, tile-aligned sublane slice.
    x_tm = jnp.transpose(x_btd, (1, 0, 2)).reshape(T * B, D).astype(jnp.float32)

    args = [x_tm]
    for layer in params["layers"]:
        args.extend([layer["w_x"], layer["w_h"], layer["b"]])
    args.extend([params["w_fc_t"], params["b_fc"]])

    # Padding-aware VMEM budget: covers v7x (64 MiB physical / 32 MiB scoped) and
    # v5e (16 MiB default scoped; we raise the scoped limit explicitly below).
    padded = sum(_padded_vmem_bytes(a.shape, a.dtype) for a in args)
    padded += _padded_vmem_bytes((B, O), jnp.float32)        # output
    padded += _padded_vmem_bytes((T * B, H), jnp.float32)    # hidden-sequence scratch
    # TODO(synk): if this trips (large T/H/B), switch to a T-grid streaming plan with
    # h/c in persistent VMEM scratch instead of the fully resident form.
    assert padded < 20 * 1024 * 1024, "sequence/weights too large for resident VMEM plan"

    kernel = functools.partial(_fused_electric_lstm_kernel, num_layers, H, B)
    vmem = pl.BlockSpec(memory_space=pltpu.MemorySpace.VMEM)
    y = pl.pallas_call(
        kernel,
        out_shape=jax.ShapeDtypeStruct((B, O), jnp.float32),
        in_specs=[vmem] * len(args),       # whole arrays resident in VMEM, no grid
        out_specs=vmem,
        scratch_shapes=[pltpu.VMEM((T * B, H), jnp.float32)],
        compiler_params=pltpu.CompilerParams(vmem_limit_bytes=32 * 1024 * 1024),
    )(*args)
    # TODO(synk): at production batch sizes add a leading batch-tile grid axis with
    # dimension_semantics=("parallel",) so v7x's 2 TensorCores split the batch.
    return jnp.squeeze(y)  # matches torch .squeeze()


electric_lstm_forward = jax.jit(electric_lstm_forward)


# ------------------------------ Parameter setup -------------------------------
def init_params(key, input_size, hidden_size, num_layers, output_size):
    """PyTorch-style init, uniform(-1/sqrt(H), 1/sqrt(H)).

    Weights are stored pre-transposed and SPLIT (w_x, w_h) so the input projection
    can be hoisted out of the recurrence; biases are pre-summed.  Weight matrices
    are bf16 (MXU-native operands); biases/state stay f32.
    """
    bound = 1.0 / np.sqrt(hidden_size)
    params = {"layers": []}
    for l in range(num_layers):
        d_in = input_size if l == 0 else hidden_size
        key, k1, k2, k3, k4 = jax.random.split(key, 5)
        w_ih = jax.random.uniform(k1, (4 * hidden_size, d_in), jnp.float32, -bound, bound)
        w_hh = jax.random.uniform(k2, (4 * hidden_size, hidden_size), jnp.float32, -bound, bound)
        b_ih = jax.random.uniform(k3, (4 * hidden_size,), jnp.float32, -bound, bound)
        b_hh = jax.random.uniform(k4, (4 * hidden_size,), jnp.float32, -bound, bound)
        params["layers"].append(
            {
                "w_x": w_ih.T.astype(jnp.bfloat16),               # (d_in, 4H)
                "w_h": w_hh.T.astype(jnp.bfloat16),               # (H, 4H)
                "b": (b_ih + b_hh).reshape(1, 4 * hidden_size),   # (1, 4H) f32
            }
        )
    key, k5, k6 = jax.random.split(key, 3)
    w_fc = jax.random.uniform(k5, (output_size, hidden_size), jnp.float32, -bound, bound)
    b_fc = jax.random.uniform(k6, (output_size,), jnp.float32, -bound, bound)
    params["w_fc_t"] = w_fc.T.astype(jnp.bfloat16)                # (H, O)
    params["b_fc"] = b_fc.reshape(1, output_size)                 # (1, O) f32
    return params


# ------------------------- Pure-JAX reference (check) --------------------------
def reference_forward(params, x_btd):
    """Straightforward per-step scan mirroring the kernel's numerics
    (bf16 matmul operands, f32 accumulation / state / elementwise)."""
    B, T, _ = x_btd.shape
    H = params["w_fc_t"].shape[0]
    seq = x_btd.astype(jnp.float32)
    for layer in params["layers"]:
        w_x, w_h, b = layer["w_x"], layer["w_h"], layer["b"]

        def step(carry, x_t, w_x=w_x, w_h=w_h, b=b):
            h, c = carry
            xp = jnp.dot(x_t.astype(jnp.bfloat16), w_x,
                         preferred_element_type=jnp.float32) + b
            gates = jnp.dot(h.astype(jnp.bfloat16), w_h,
                            preferred_element_type=jnp.float32) + xp
            i_g = jax.nn.sigmoid(gates[:, 0 * H:1 * H])
            f_g = jax.nn.sigmoid(gates[:, 1 * H:2 * H])
            g_g = jnp.tanh(gates[:, 2 * H:3 * H])
            o_g = jax.nn.sigmoid(gates[:, 3 * H:4 * H])
            c = f_g * c + i_g * g_g
            h = o_g * jnp.tanh(c)
            return (h, c), h

        init = (jnp.zeros((B, H), jnp.float32), jnp.zeros((B, H), jnp.float32))
        _, hs = jax.lax.scan(step, init, jnp.transpose(seq, (1, 0, 2)))  # (T, B, H)
        seq = jnp.transpose(hs, (1, 0, 2))                                # (B, T, H)
    y = jnp.dot(seq[:, -1, :].astype(jnp.bfloat16), params["w_fc_t"],
                preferred_element_type=jnp.float32) + params["b_fc"]
    return jnp.squeeze(y)


# ----------------------------------- Main --------------------------------------
if __name__ == "__main__":
    INPUT_SIZE = 8
    HIDDEN_SIZE = 32
    NUM_LAYERS = 2
    OUTPUT_SIZE = 1
    BATCH = 8   # multiple of 8 -> every per-step tile is sublane-aligned
    SEQ = 8

    key = jax.random.PRNGKey(0)
    key, pkey, xkey = jax.random.split(key, 3)
    params = init_params(pkey, INPUT_SIZE, HIDDEN_SIZE, NUM_LAYERS, OUTPUT_SIZE)
    x = jax.random.normal(xkey, (BATCH, SEQ, INPUT_SIZE), jnp.float32)

    out = jax.block_until_ready(electric_lstm_forward(params, x))
    ref = jax.block_until_ready(reference_forward(params, x))
    np.testing.assert_allclose(np.asarray(out), np.asarray(ref), rtol=1e-4, atol=1e-4)

    print("KERNEL_OK")
</pallas_src>

<mosaic_0001>
module attributes {stable_mosaic.version = 11 : i64} {
  func.func @_fused_electric_lstm_kernel(%arg0: memref<64x8xf32, #tpu.memory_space<vmem>>, %arg1: memref<8x128xbf16, #tpu.memory_space<vmem>>, %arg2: memref<32x128xbf16, #tpu.memory_space<vmem>>, %arg3: memref<1x128xf32, #tpu.memory_space<vmem>>, %arg4: memref<32x128xbf16, #tpu.memory_space<vmem>>, %arg5: memref<32x128xbf16, #tpu.memory_space<vmem>>, %arg6: memref<1x128xf32, #tpu.memory_space<vmem>>, %arg7: memref<32x1xbf16, #tpu.memory_space<vmem>>, %arg8: memref<1x1xf32, #tpu.memory_space<vmem>>, %arg9: memref<8x1xf32, #tpu.memory_space<vmem>>, %arg10: memref<64x32xf32, #tpu.memory_space<vmem>>) attributes {dimension_semantics = [], scalar_prefetch = 0 : i64, scratch_operands = 1 : i64, tpu.core_type = #tpu.core_type<tc>} {
    %c0 = arith.constant 0 : index
    %c0_0 = arith.constant 0 : index
    %0 = vector.load %arg0[%c0, %c0_0] : memref<64x8xf32, #tpu.memory_space<vmem>>, vector<64x8xf32>
    %c0_1 = arith.constant 0 : index
    %c0_2 = arith.constant 0 : index
    %1 = vector.load %arg1[%c0_1, %c0_2] : memref<8x128xbf16, #tpu.memory_space<vmem>>, vector<8x128xbf16>
    %c0_3 = arith.constant 0 : index
    %c0_4 = arith.constant 0 : index
    %2 = vector.load %arg2[%c0_3, %c0_4] : memref<32x128xbf16, #tpu.memory_space<vmem>>, vector<32x128xbf16>
    %c0_5 = arith.constant 0 : index
    %c0_6 = arith.constant 0 : index
    %3 = vector.load %arg3[%c0_5, %c0_6] : memref<1x128xf32, #tpu.memory_space<vmem>>, vector<1x128xf32>
    %4 = arith.truncf %0 : vector<64x8xf32> to vector<64x8xbf16>
    %cst = arith.constant dense<0.000000e+00> : vector<64x128xf32>
    %5 = tpu.matmul %4, %1, %cst {dimension_numbers = #tpu.dot_dimension_numbers<[1], [0], [0], [1], [0, 0, 1, 1], [], []>} : vector<64x8xbf16>, vector<8x128xbf16>, vector<64x128xf32> -> vector<64x128xf32>
    %6 = vector.broadcast %3 : vector<1x128xf32> to vector<64x128xf32>
    %7 = arith.addf %5, %6 : vector<64x128xf32>
    %cst_7 = arith.constant 0.000000e+00 : f32
    %8 = vector.broadcast %cst_7 : f32 to vector<8x32xf32>
    %cst_8 = arith.constant 0.000000e+00 : f32
    %9 = vector.broadcast %cst_8 : f32 to vector<8x32xf32>
    %10 = arith.truncf %8 : vector<8x32xf32> to vector<8x32xbf16>
    %cst_9 = arith.constant dense<0.000000e+00> : vector<8x128xf32>
    %11 = tpu.matmul %10, %2, %cst_9 {dimension_numbers = #tpu.dot_dimension_numbers<[1], [0], [0], [1], [0, 0, 1, 1], [], []>} : vector<8x32xbf16>, vector<32x128xbf16>, vector<8x128xf32> -> vector<8x128xf32>
    %12 = vector.extract_strided_slice %7 {offsets = [0, 0], sizes = [8, 128], strides = [1, 1]} : vector<64x128xf32> to vector<8x128xf32>
    %13 = arith.addf %11, %12 : vector<8x128xf32>
    %14 = arith.negf %13 : vector<8x128xf32>
    %15 = math.exp %14 : vector<8x128xf32>
    %cst_10 = arith.constant 1.000000e+00 : f32
    %16 = vector.broadcast %cst_10 : f32 to vector<8x128xf32>
    %17 = arith.addf %16, %15 : vector<8x128xf32>
    %18 = arith.divf %16, %17 : vector<8x128xf32>
    %19 = vector.extract_strided_slice %18 {offsets = [0, 0], sizes = [8, 32], strides = [1, 1]} : vector<8x128xf32> to vector<8x32xf32>
    %20 = vector.extract_strided_slice %18 {offsets = [0, 32], sizes = [8, 32], strides = [1, 1]} : vector<8x128xf32> to vector<8x32xf32>
    %21 = vector.extract_strided_slice %18 {offsets = [0, 96], sizes = [8, 32], strides = [1, 1]} : vector<8x128xf32> to vector<8x32xf32>
    %22 = vector.extract_strided_slice %13 {offsets = [0, 64], sizes = [8, 32], strides = [1, 1]} : vector<8x128xf32> to vector<8x32xf32>
    %23 = math.tanh %22 : vector<8x32xf32>
    %24 = arith.mulf %20, %9 : vector<8x32xf32>
    %25 = arith.mulf %19, %23 : vector<8x32xf32>
    %26 = arith.addf %24, %25 : vector<8x32xf32>
    %27 = math.tanh %26 : vector<8x32xf32>
    %28 = arith.mulf %21, %27 : vector<8x32xf32>
    %c0_11 = arith.constant 0 : index
    %c0_12 = arith.constant 0 : index
    %29 = vector.load %arg10[%c0_11, %c0_12] : memref<64x32xf32, #tpu.memory_space<vmem>>, vector<8x32xf32>
    tpu.vector_store %arg10[%c0_11, %c0_12], %28 {strides = array<i32>} : memref<64x32xf32, #tpu.memory_space<vmem>>, vector<8x32xf32>,
    %30 = arith.truncf %28 : vector<8x32xf32> to vector<8x32xbf16>
    %cst_13 = arith.constant dense<0.000000e+00> : vector<8x128xf32>
    %31 = tpu.matmul %30, %2, %cst_13 {dimension_numbers = #tpu.dot_dimension_numbers<[1], [0], [0], [1], [0, 0, 1, 1], [], []>} : vector<8x32xbf16>, vector<32x128xbf16>, vector<8x128xf32> -> vector<8x128xf32>
    %32 = vector.extract_strided_slice %7 {offsets = [8, 0], sizes = [8, 128], strides = [1, 1]} : vector<64x128xf32> to vector<8x128xf32>
    %33 = arith.addf %31, %32 : vector<8x128xf32>
    %34 = arith.negf %33 : vector<8x128xf32>
    %35 = math.exp %34 : vector<8x128xf32>
    %cst_14 = arith.constant 1.000000e+00 : f32
    %36 = vector.broadcast %cst_14 : f32 to vector<8x128xf32>
    %37 = arith.addf %36, %35 : vector<8x128xf32>
    %38 = arith.divf %36, %37 : vector<8x128xf32>
    %39 = vector.extract_strided_slice %38 {offsets = [0, 0], sizes = [8, 32], strides = [1, 1]} : vector<8x128xf32> to vector<8x32xf32>
    %40 = vector.extract_strided_slice %38 {offsets = [0, 32], sizes = [8, 32], strides = [1, 1]} : vector<8x128xf32> to vector<8x32xf32>
    %41 = vector.extract_strided_slice %38 {offsets = [0, 96], sizes = [8, 32], strides = [1, 1]} : vector<8x128xf32> to vector<8x32xf32>
    %42 = vector.extract_strided_slice %33 {offsets = [0, 64], sizes = [8, 32], strides = [1, 1]} : vector<8x128xf32> to vector<8x32xf32>
    %43 = math.tanh %42 : vector<8x32xf32>
    %44 = arith.mulf %40, %26 : vector<8x32xf32>
    %45 = arith.mulf %39, %43 : vector<8x32xf32>
    %46 = arith.addf %44, %45 : vector<8x32xf32>
    %47 = math.tanh %46 : vector<8x32xf32>
    %48 = arith.mulf %41, %47 : vector<8x32xf32>
    %c8 = arith.constant 8 : index
    %c0_15 = arith.constant 0 : index
    %49 = vector.load %arg10[%c8, %c0_15] : memref<64x32xf32, #tpu.memory_space<vmem>>, vector<8x32xf32>
    tpu.vector_store %arg10[%c8, %c0_15], %48 {strides = array<i32>} : memref<64x32xf32, #tpu.memory_space<vmem>>, vector<8x32xf32>,
    %50 = arith.truncf %48 : vector<8x32xf32> to vector<8x32xbf16>
    %cst_16 = arith.constant dense<0.000000e+00> : vector<8x128xf32>
    %51 = tpu.matmul %50, %2, %cst_16 {dimension_numbers = #tpu.dot_dimension_numbers<[1], [0], [0], [1], [0, 0, 1, 1], [], []>} : vector<8x32xbf16>, vector<32x128xbf16>, vector<8x128xf32> -> vector<8x128xf32>
    %52 = vector.extract_strided_slice %7 {offsets = [16, 0], sizes = [8, 128], strides = [1, 1]} : vector<64x128xf32> to vector<8x128xf32>
    %53 = arith.addf %51, %52 : vector<8x128xf32>
    %54 = arith.negf %53 : vector<8x128xf32>
    %55 = math.exp %54 : vector<8x128xf32>
    %cst_17 = arith.constant 1.000000e+00 : f32
    %56 = vector.broadcast %cst_17 : f32 to vector<8x128xf32>
    %57 = arith.addf %56, %55 : vector<8x128xf32>
    %58 = arith.divf %56, %57 : vector<8x128xf32>
    %59 = vector.extract_strided_slice %58 {offsets = [0, 0], sizes = [8, 32], strides = [1, 1]} : vector<8x128xf32> to vector<8x32xf32>
    %60 = vector.extract_strided_slice %58 {offsets = [0, 32], sizes = [8, 32], strides = [1, 1]} : vector<8x128xf32> to vector<8x32xf32>
    %61 = vector.extract_strided_slice %58 {offsets = [0, 96], sizes = [8, 32], strides = [1, 1]} : vector<8x128xf32> to vector<8x32xf32>
    %62 = vector.extract_strided_slice %53 {offsets = [0, 64], sizes = [8, 32], strides = [1, 1]} : vector<8x128xf32> to vector<8x32xf32>
    %63 = math.tanh %62 : vector<8x32xf32>
    %64 = arith.mulf %60, %46 : vector<8x32xf32>
    %65 = arith.mulf %59, %63 : vector<8x32xf32>
    %66 = arith.addf %64, %65 : vector<8x32xf32>
    %67 = math.tanh %66 : vector<8x32xf32>
    %68 = arith.mulf %61, %67 : vector<8x32xf32>
    %c16 = arith.constant 16 : index
    %c0_18 = arith.constant 0 : index
    %69 = vector.load %arg10[%c16, %c0_18] : memref<64x32xf32, #tpu.memory_space<vmem>>, vector<8x32xf32>
    tpu.vector_store %arg10[%c16, %c0_18], %68 {strides = array<i32>} : memref<64x32xf32, #tpu.memory_space<vmem>>, vector<8x32xf32>,
    %70 = arith.truncf %68 : vector<8x32xf32> to vector<8x32xbf16>
    %cst_19 = arith.constant dense<0.000000e+00> : vector<8x128xf32>
    %71 = tpu.matmul %70, %2, %cst_19 {dimension_numbers = #tpu.dot_dimension_numbers<[1], [0], [0], [1], [0, 0, 1, 1], [], []>} : vector<8x32xbf16>, vector<32x128xbf16>, vector<8x128xf32> -> vector<8x128xf32>
    %72 = vector.extract_strided_slice %7 {offsets = [24, 0], sizes = [8, 128], strides = [1, 1]} : vector<64x128xf32> to vector<8x128xf32>
    %73 = arith.addf %71, %72 : vector<8x128xf32>
    %74 = arith.negf %73 : vector<8x128xf32>
    %75 = math.exp %74 : vector<8x128xf32>
    %cst_20 = arith.constant 1.000000e+00 : f32
    %76 = vector.broadcast %cst_20 : f32 to vector<8x128xf32>
    %77 = arith.addf %76, %75 : vector<8x128xf32>
    %78 = arith.divf %76, %77 : vector<8x128xf32>
    %79 = vector.extract_strided_slice %78 {offsets = [0, 0], sizes = [8, 32], strides = [1, 1]} : vector<8x128xf32> to vector<8x32xf32>
    %80 = vector.extract_strided_slice %78 {offsets = [0, 32], sizes = [8, 32], strides = [1, 1]} : vector<8x128xf32> to vector<8x32xf32>
    %81 = vector.extract_strided_slice %78 {offsets = [0, 96], sizes = [8, 32], strides = [1, 1]} : vector<8x128xf32> to vector<8x32xf32>
    %82 = vector.extract_strided_slice %73 {offsets = [0, 64], sizes = [8, 32], strides = [1, 1]} : vector<8x128xf32> to vector<8x32xf32>
    %83 = math.tanh %82 : vector<8x32xf32>
    %84 = arith.mulf %80, %66 : vector<8x32xf32>
    %85 = arith.mulf %79, %83 : vector<8x32xf32>
    %86 = arith.addf %84, %85 : vector<8x32xf32>
    %87 = math.tanh %86 : vector<8x32xf32>
    %88 = arith.mulf %81, %87 : vector<8x32xf32>
    %c24 = arith.constant 24 : index
    %c0_21 = arith.constant 0 : index
    %89 = vector.load %arg10[%c24, %c0_21] : memref<64x32xf32, #tpu.memory_space<vmem>>, vector<8x32xf32>
    tpu.vector_store %arg10[%c24, %c0_21], %88 {strides = array<i32>} : memref<64x32xf32, #tpu.memory_space<vmem>>, vector<8x32xf32>,
    %90 = arith.truncf %88 : vector<8x32xf32> to vector<8x32xbf16>
    %cst_22 = arith.constant dense<0.000000e+00> : vector<8x128xf32>
    %91 = tpu.matmul %90, %2, %cst_22 {dimension_numbers = #tpu.dot_dimension_numbers<[1], [0], [0], [1], [0, 0, 1, 1], [], []>} : vector<8x32xbf16>, vector<32x128xbf16>, vector<8x128xf32> -> vector<8x128xf32>
    %92 = vector.extract_strided_slice %7 {offsets = [32, 0], sizes = [8, 128], strides = [1, 1]} : vector<64x128xf32> to vector<8x128xf32>
    %93 = arith.addf %91, %92 : vector<8x128xf32>
    %94 = arith.negf %93 : vector<8x128xf32>
    %95 = math.exp %94 : vector<8x128xf32>
    %cst_23 = arith.constant 1.000000e+00 : f32
    %96 = vector.broadcast %cst_23 : f32 to vector<8x128xf32>
    %97 = arith.addf %96, %95 : vector<8x128xf32>
    %98 = arith.divf %96, %97 : vector<8x128xf32>
    %99 = vector.extract_strided_slice %98 {offsets = [0, 0], sizes = [8, 32], strides = [1, 1]} : vector<8x128xf32> to vector<8x32xf32>
    %100 = vector.extract_strided_slice %98 {offsets = [0, 32], sizes = [8, 32], strides = [1, 1]} : vector<8x128xf32> to vector<8x32xf32>
    %101 = vector.extract_strided_slice %98 {offsets = [0, 96], sizes = [8, 32], strides = [1, 1]} : vector<8x128xf32> to vector<8x32xf32>
    %102 = vector.extract_strided_slice %93 {offsets = [0, 64], sizes = [8, 32], strides = [1, 1]} : vector<8x128xf32> to vector<8x32xf32>
    %103 = math.tanh %102 : vector<8x32xf32>
    %104 = arith.mulf %100, %86 : vector<8x32xf32>
    %105 = arith.mulf %99, %103 : vector<8x32xf32>
    %106 = arith.addf %104, %105 : vector<8x32xf32>
    %107 = math.tanh %106 : vector<8x32xf32>
    %108 = arith.mulf %101, %107 : vector<8x32xf32>
    %c32 = arith.constant 32 : index
    %c0_24 = arith.constant 0 : index
    %109 = vector.load %arg10[%c32, %c0_24] : memref<64x32xf32, #tpu.memory_space<vmem>>, vector<8x32xf32>
    tpu.vector_store %arg10[%c32, %c0_24], %108 {strides = array<i32>} : memref<64x32xf32, #tpu.memory_space<vmem>>, vector<8x32xf32>,
    %110 = arith.truncf %108 : vector<8x32xf32> to vector<8x32xbf16>
    %cst_25 = arith.constant dense<0.000000e+00> : vector<8x128xf32>
    %111 = tpu.matmul %110, %2, %cst_25 {dimension_numbers = #tpu.dot_dimension_numbers<[1], [0], [0], [1], [0, 0, 1, 1], [], []>} : vector<8x32xbf16>, vector<32x128xbf16>, vector<8x128xf32> -> vector<8x128xf32>
    %112 = vector.extract_strided_slice %7 {offsets = [40, 0], sizes = [8, 128], strides = [1, 1]} : vector<64x128xf32> to vector<8x128xf32>
    %113 = arith.addf %111, %112 : vector<8x128xf32>
    %114 = arith.negf %113 : vector<8x128xf32>
    %115 = math.exp %114 : vector<8x128xf32>
    %cst_26 = arith.constant 1.000000e+00 : f32
    %116 = vector.broadcast %cst_26 : f32 to vector<8x128xf32>
    %117 = arith.addf %116, %115 : vector<8x128xf32>
    %118 = arith.divf %116, %117 : vector<8x128xf32>
    %119 = vector.extract_strided_slice %118 {offsets = [0, 0], sizes = [8, 32], strides = [1, 1]} : vector<8x128xf32> to vector<8x32xf32>
    %120 = vector.extract_strided_slice %118 {offsets = [0, 32], sizes = [8, 32], strides = [1, 1]} : vector<8x128xf32> to vector<8x32xf32>
    %121 = vector.extract_strided_slice %118 {offsets = [0, 96], sizes = [8, 32], strides = [1, 1]} : vector<8x128xf32> to vector<8x32xf32>
    %122 = vector.extract_strided_slice %113 {offsets = [0, 64], sizes = [8, 32], strides = [1, 1]} : vector<8x128xf32> to vector<8x32xf32>
    %123 = math.tanh %122 : vector<8x32xf32>
    %124 = arith.mulf %120, %106 : vector<8x32xf32>
    %125 = arith.mulf %119, %123 : vector<8x32xf32>
    %126 = arith.addf %124, %125 : vector<8x32xf32>
    %127 = math.tanh %126 : vector<8x32xf32>
    %128 = arith.mulf %121, %127 : vector<8x32xf32>
    %c40 = arith.constant 40 : index
    %c0_27 = arith.constant 0 : index
    %129 = vector.load %arg10[%c40, %c0_27] : memref<64x32xf32, #tpu.memory_space<vmem>>, vector<8x32xf32>
    tpu.vector_store %arg10[%c40, %c0_27], %128 {strides = array<i32>} : memref<64x32xf32, #tpu.memory_space<vmem>>, vector<8x32xf32>,
    %130 = arith.truncf %128 : vector<8x32xf32> to vector<8x32xbf16>
    %cst_28 = arith.constant dense<0.000000e+00> : vector<8x128xf32>
    %131 = tpu.matmul %130, %2, %cst_28 {dimension_numbers = #tpu.dot_dimension_numbers<[1], [0], [0], [1], [0, 0, 1, 1], [], []>} : vector<8x32xbf16>, vector<32x128xbf16>, vector<8x128xf32> -> vector<8x128xf32>
    %132 = vector.extract_strided_slice %7 {offsets = [48, 0], sizes = [8, 128], strides = [1, 1]} : vector<64x128xf32> to vector<8x128xf32>
    %133 = arith.addf %131, %132 : vector<8x128xf32>
    %134 = arith.negf %133 : vector<8x128xf32>
    %135 = math.exp %134 : vector<8x128xf32>
    %cst_29 = arith.constant 1.000000e+00 : f32
    %136 = vector.broadcast %cst_29 : f32 to vector<8x128xf32>
    %137 = arith.addf %136, %135 : vector<8x128xf32>
    %138 = arith.divf %136, %137 : vector<8x128xf32>
    %139 = vector.extract_strided_slice %138 {offsets = [0, 0], sizes = [8, 32], strides = [1, 1]} : vector<8x128xf32> to vector<8x32xf32>
    %140 = vector.extract_strided_slice %138 {offsets = [0, 32], sizes = [8, 32], strides = [1, 1]} : vector<8x128xf32> to vector<8x32xf32>
    %141 = vector.extract_strided_slice %138 {offsets = [0, 96], sizes = [8, 32], strides = [1, 1]} : vector<8x128xf32> to vector<8x32xf32>
    %142 = vector.extract_strided_slice %133 {offsets = [0, 64], sizes = [8, 32], strides = [1, 1]} : vector<8x128xf32> to vector<8x32xf32>
    %143 = math.tanh %142 : vector<8x32xf32>
    %144 = arith.mulf %140, %126 : vector<8x32xf32>
    %145 = arith.mulf %139, %143 : vector<8x32xf32>
    %146 = arith.addf %144, %145 : vector<8x32xf32>
    %147 = math.tanh %146 : vector<8x32xf32>
    %148 = arith.mulf %141, %147 : vector<8x32xf32>
    %c48 = arith.constant 48 : index
    %c0_30 = arith.constant 0 : index
    %149 = vector.load %arg10[%c48, %c0_30] : memref<64x32xf32, #tpu.memory_space<vmem>>, vector<8x32xf32>
    tpu.vector_store %arg10[%c48, %c0_30], %148 {strides = array<i32>} : memref<64x32xf32, #tpu.memory_space<vmem>>, vector<8x32xf32>,
    %150 = arith.truncf %148 : vector<8x32xf32> to vector<8x32xbf16>
    %cst_31 = arith.constant dense<0.000000e+00> : vector<8x128xf32>
    %151 = tpu.matmul %150, %2, %cst_31 {dimension_numbers = #tpu.dot_dimension_numbers<[1], [0], [0], [1], [0, 0, 1, 1], [], []>} : vector<8x32xbf16>, vector<32x128xbf16>, vector<8x128xf32> -> vector<8x128xf32>
    %152 = vector.extract_strided_slice %7 {offsets = [56, 0], sizes = [8, 128], strides = [1, 1]} : vector<64x128xf32> to vector<8x128xf32>
    %153 = arith.addf %151, %152 : vector<8x128xf32>
    %154 = arith.negf %153 : vector<8x128xf32>
    %155 = math.exp %154 : vector<8x128xf32>
    %cst_32 = arith.constant 1.000000e+00 : f32
    %156 = vector.broadcast %cst_32 : f32 to vector<8x128xf32>
    %157 = arith.addf %156, %155 : vector<8x128xf32>
    %158 = arith.divf %156, %157 : vector<8x128xf32>
    %159 = vector.extract_strided_slice %158 {offsets = [0, 0], sizes = [8, 32], strides = [1, 1]} : vector<8x128xf32> to vector<8x32xf32>
    %160 = vector.extract_strided_slice %158 {offsets = [0, 32], sizes = [8, 32], strides = [1, 1]} : vector<8x128xf32> to vector<8x32xf32>
    %161 = vector.extract_strided_slice %158 {offsets = [0, 96], sizes = [8, 32], strides = [1, 1]} : vector<8x128xf32> to vector<8x32xf32>
    %162 = vector.extract_strided_slice %153 {offsets = [0, 64], sizes = [8, 32], strides = [1, 1]} : vector<8x128xf32> to vector<8x32xf32>
    %163 = math.tanh %162 : vector<8x32xf32>
    %164 = arith.mulf %160, %146 : vector<8x32xf32>
    %165 = arith.mulf %159, %163 : vector<8x32xf32>
    %166 = arith.addf %164, %165 : vector<8x32xf32>
    %167 = math.tanh %166 : vector<8x32xf32>
    %168 = arith.mulf %161, %167 : vector<8x32xf32>
    %c56 = arith.constant 56 : index
    %c0_33 = arith.constant 0 : index
    %169 = vector.load %arg10[%c56, %c0_33] : memref<64x32xf32, #tpu.memory_space<vmem>>, vector<8x32xf32>
    tpu.vector_store %arg10[%c56, %c0_33], %168 {strides = array<i32>} : memref<64x32xf32, #tpu.memory_space<vmem>>, vector<8x32xf32>,
    %c0_34 = arith.constant 0 : index
    %c0_35 = arith.constant 0 : index
    %170 = vector.load %arg10[%c0_34, %c0_35] : memref<64x32xf32, #tpu.memory_space<vmem>>, vector<64x32xf32>
    %c0_36 = arith.constant 0 : index
    %c0_37 = arith.constant 0 : index
    %171 = vector.load %arg4[%c0_36, %c0_37] : memref<32x128xbf16, #tpu.memory_space<vmem>>, vector<32x128xbf16>
    %c0_38 = arith.constant 0 : index
    %c0_39 = arith.constant 0 : index
    %172 = vector.load %arg5[%c0_38, %c0_39] : memref<32x128xbf16, #tpu.memory_space<vmem>>, vector<32x128xbf16>
    %c0_40 = arith.constant 0 : index
    %c0_41 = arith.constant 0 : index
    %173 = vector.load %arg6[%c0_40, %c0_41] : memref<1x128xf32, #tpu.memory_space<vmem>>, vector<1x128xf32>
    %174 = arith.truncf %170 : vector<64x32xf32> to vector<64x32xbf16>
    %cst_42 = arith.constant dense<0.000000e+00> : vector<64x128xf32>
    %175 = tpu.matmul %174, %171, %cst_42 {dimension_numbers = #tpu.dot_dimension_numbers<[1], [0], [0], [1], [0, 0, 1, 1], [], []>} : vector<64x32xbf16>, vector<32x128xbf16>, vector<64x128xf32> -> vector<64x128xf32>
    %176 = vector.broadcast %173 : vector<1x128xf32> to vector<64x128xf32>
    %177 = arith.addf %175, %176 : vector<64x128xf32>
    %cst_43 = arith.constant 0.000000e+00 : f32
    %178 = vector.broadcast %cst_43 : f32 to vector<8x32xf32>
    %cst_44 = arith.constant 0.000000e+00 : f32
    %179 = vector.broadcast %cst_44 : f32 to vector<8x32xf32>
    %180 = arith.truncf %178 : vector<8x32xf32> to vector<8x32xbf16>
    %cst_45 = arith.constant dense<0.000000e+00> : vector<8x128xf32>
    %181 = tpu.matmul %180, %172, %cst_45 {dimension_numbers = #tpu.dot_dimension_numbers<[1], [0], [0], [1], [0, 0, 1, 1], [], []>} : vector<8x32xbf16>, vector<32x128xbf16>, vector<8x128xf32> -> vector<8x128xf32>
    %182 = vector.extract_strided_slice %177 {offsets = [0, 0], sizes = [8, 128], strides = [1, 1]} : vector<64x128xf32> to vector<8x128xf32>
    %183 = arith.addf %181, %182 : vector<8x128xf32>
    %184 = arith.negf %183 : vector<8x128xf32>
    %185 = math.exp %184 : vector<8x128xf32>
    %cst_46 = arith.constant 1.000000e+00 : f32
    %186 = vector.broadcast %cst_46 : f32 to vector<8x128xf32>
    %187 = arith.addf %186, %185 : vector<8x128xf32>
    %188 = arith.divf %186, %187 : vector<8x128xf32>
    %189 = vector.extract_strided_slice %188 {offsets = [0, 0], sizes = [8, 32], strides = [1, 1]} : vector<8x128xf32> to vector<8x32xf32>
    %190 = vector.extract_strided_slice %188 {offsets = [0, 32], sizes = [8, 32], strides = [1, 1]} : vector<8x128xf32> to vector<8x32xf32>
    %191 = vector.extract_strided_slice %188 {offsets = [0, 96], sizes = [8, 32], strides = [1, 1]} : vector<8x128xf32> to vector<8x32xf32>
    %192 = vector.extract_strided_slice %183 {offsets = [0, 64], sizes = [8, 32], strides = [1, 1]} : vector<8x128xf32> to vector<8x32xf32>
    %193 = math.tanh %192 : vector<8x32xf32>
    %194 = arith.mulf %190, %179 : vector<8x32xf32>
    %195 = arith.mulf %189, %193 : vector<8x32xf32>
    %196 = arith.addf %194, %195 : vector<8x32xf32>
    %197 = math.tanh %196 : vector<8x32xf32>
    %198 = arith.mulf %191, %197 : vector<8x32xf32>
    %199 = arith.truncf %198 : vector<8x32xf32> to vector<8x32xbf16>
    %cst_47 = arith.constant dense<0.000000e+00> : vector<8x128xf32>
    %200 = tpu.matmul %199, %172, %cst_47 {dimension_numbers = #tpu.dot_dimension_numbers<[1], [0], [0], [1], [0, 0, 1, 1], [], []>} : vector<8x32xbf16>, vector<32x128xbf16>, vector<8x128xf32> -> vector<8x128xf32>
    %201 = vector.extract_strided_slice %177 {offsets = [8, 0], sizes = [8, 128], strides = [1, 1]} : vector<64x128xf32> to vector<8x128xf32>
    %202 = arith.addf %200, %201 : vector<8x128xf32>
    %203 = arith.negf %202 : vector<8x128xf32>
    %204 = math.exp %203 : vector<8x128xf32>
    %cst_48 = arith.constant 1.000000e+00 : f32
    %205 = vector.broadcast %cst_48 : f32 to vector<8x128xf32>
    %206 = arith.addf %205, %204 : vector<8x128xf32>
    %207 = arith.divf %205, %206 : vector<8x128xf32>
    %208 = vector.extract_strided_slice %207 {offsets = [0, 0], sizes = [8, 32], strides = [1, 1]} : vector<8x128xf32> to vector<8x32xf32>
    %209 = vector.extract_strided_slice %207 {offsets = [0, 32], sizes = [8, 32], strides = [1, 1]} : vector<8x128xf32> to vector<8x32xf32>
    %210 = vector.extract_strided_slice %207 {offsets = [0, 96], sizes = [8, 32], strides = [1, 1]} : vector<8x128xf32> to vector<8x32xf32>
    %211 = vector.extract_strided_slice %202 {offsets = [0, 64], sizes = [8, 32], strides = [1, 1]} : vector<8x128xf32> to vector<8x32xf32>
    %212 = math.tanh %211 : vector<8x32xf32>
    %213 = arith.mulf %209, %196 : vector<8x32xf32>
    %214 = arith.mulf %208, %212 : vector<8x32xf32>
    %215 = arith.addf %213, %214 : vector<8x32xf32>
    %216 = math.tanh %215 : vector<8x32xf32>
    %217 = arith.mulf %210, %216 : vector<8x32xf32>
    %218 = arith.truncf %217 : vector<8x32xf32> to vector<8x32xbf16>
    %cst_49 = arith.constant dense<0.000000e+00> : vector<8x128xf32>
    %219 = tpu.matmul %218, %172, %cst_49 {dimension_numbers = #tpu.dot_dimension_numbers<[1], [0], [0], [1], [0, 0, 1, 1], [], []>} : vector<8x32xbf16>, vector<32x128xbf16>, vector<8x128xf32> -> vector<8x128xf32>
    %220 = vector.extract_strided_slice %177 {offsets = [16, 0], sizes = [8, 128], strides = [1, 1]} : vector<64x128xf32> to vector<8x128xf32>
    %221 = arith.addf %219, %220 : vector<8x128xf32>
    %222 = arith.negf %221 : vector<8x128xf32>
    %223 = math.exp %222 : vector<8x128xf32>
    %cst_50 = arith.constant 1.000000e+00 : f32
    %224 = vector.broadcast %cst_50 : f32 to vector<8x128xf32>
    %225 = arith.addf %224, %223 : vector<8x128xf32>
    %226 = arith.divf %224, %225 : vector<8x128xf32>
    %227 = vector.extract_strided_slice %226 {offsets = [0, 0], sizes = [8, 32], strides = [1, 1]} : vector<8x128xf32> to vector<8x32xf32>
    %228 = vector.extract_strided_slice %226 {offsets = [0, 32], sizes = [8, 32], strides = [1, 1]} : vector<8x128xf32> to vector<8x32xf32>
    %229 = vector.extract_strided_slice %226 {offsets = [0, 96], sizes = [8, 32], strides = [1, 1]} : vector<8x128xf32> to vector<8x32xf32>
    %230 = vector.extract_strided_slice %221 {offsets = [0, 64], sizes = [8, 32], strides = [1, 1]} : vector<8x128xf32> to vector<8x32xf32>
    %231 = math.tanh %230 : vector<8x32xf32>
    %232 = arith.mulf %228, %215 : vector<8x32xf32>
    %233 = arith.mulf %227, %231 : vector<8x32xf32>
    %234 = arith.addf %232, %233 : vector<8x32xf32>
    %235 = math.tanh %234 : vector<8x32xf32>
    %236 = arith.mulf %229, %235 : vector<8x32xf32>
    %237 = arith.truncf %236 : vector<8x32xf32> to vector<8x32xbf16>
    %cst_51 = arith.constant dense<0.000000e+00> : vector<8x128xf32>
    %238 = tpu.matmul %237, %172, %cst_51 {dimension_numbers = #tpu.dot_dimension_numbers<[1], [0], [0], [1], [0, 0, 1, 1], [], []>} : vector<8x32xbf16>, vector<32x128xbf16>, vector<8x128xf32> -> vector<8x128xf32>
    %239 = vector.extract_strided_slice %177 {offsets = [24, 0], sizes = [8, 128], strides = [1, 1]} : vector<64x128xf32> to vector<8x128xf32>
    %240 = arith.addf %238, %239 : vector<8x128xf32>
    %241 = arith.negf %240 : vector<8x128xf32>
    %242 = math.exp %241 : vector<8x128xf32>
    %cst_52 = arith.constant 1.000000e+00 : f32
    %243 = vector.broadcast %cst_52 : f32 to vector<8x128xf32>
    %244 = arith.addf %243, %242 : vector<8x128xf32>
    %245 = arith.divf %243, %244 : vector<8x128xf32>
    %246 = vector.extract_strided_slice %245 {offsets = [0, 0], sizes = [8, 32], strides = [1, 1]} : vector<8x128xf32> to vector<8x32xf32>
    %247 = vector.extract_strided_slice %245 {offsets = [0, 32], sizes = [8, 32], strides = [1, 1]} : vector<8x128xf32> to vector<8x32xf32>
    %248 = vector.extract_strided_slice %245 {offsets = [0, 96], sizes = [8, 32], strides = [1, 1]} : vector<8x128xf32> to vector<8x32xf32>
    %249 = vector.extract_strided_slice %240 {offsets = [0, 64], sizes = [8, 32], strides = [1, 1]} : vector<8x128xf32> to vector<8x32xf32>
    %250 = math.tanh %249 : vector<8x32xf32>
    %251 = arith.mulf %247, %234 : vector<8x32xf32>
    %252 = arith.mulf %246, %250 : vector<8x32xf32>
    %253 = arith.addf %251, %252 : vector<8x32xf32>
    %254 = math.tanh %253 : vector<8x32xf32>
    %255 = arith.mulf %248, %254 : vector<8x32xf32>
    %256 = arith.truncf %255 : vector<8x32xf32> to vector<8x32xbf16>
    %cst_53 = arith.constant dense<0.000000e+00> : vector<8x128xf32>
    %257 = tpu.matmul %256, %172, %cst_53 {dimension_numbers = #tpu.dot_dimension_numbers<[1], [0], [0], [1], [0, 0, 1, 1], [], []>} : vector<8x32xbf16>, vector<32x128xbf16>, vector<8x128xf32> -> vector<8x128xf32>
    %258 = vector.extract_strided_slice %177 {offsets = [32, 0], sizes = [8, 128], strides = [1, 1]} : vector<64x128xf32> to vector<8x128xf32>
    %259 = arith.addf %257, %258 : vector<8x128xf32>
    %260 = arith.negf %259 : vector<8x128xf32>
    %261 = math.exp %260 : vector<8x128xf32>
    %cst_54 = arith.constant 1.000000e+00 : f32
    %262 = vector.broadcast %cst_54 : f32 to vector<8x128xf32>
    %263 = arith.addf %262, %261 : vector<8x128xf32>
    %264 = arith.divf %262, %263 : vector<8x128xf32>
    %265 = vector.extract_strided_slice %264 {offsets = [0, 0], sizes = [8, 32], strides = [1, 1]} : vector<8x128xf32> to vector<8x32xf32>
    %266 = vector.extract_strided_slice %264 {offsets = [0, 32], sizes = [8, 32], strides = [1, 1]} : vector<8x128xf32> to vector<8x32xf32>
    %267 = vector.extract_strided_slice %264 {offsets = [0, 96], sizes = [8, 32], strides = [1, 1]} : vector<8x128xf32> to vector<8x32xf32>
    %268 = vector.extract_strided_slice %259 {offsets = [0, 64], sizes = [8, 32], strides = [1, 1]} : vector<8x128xf32> to vector<8x32xf32>
    %269 = math.tanh %268 : vector<8x32xf32>
    %270 = arith.mulf %266, %253 : vector<8x32xf32>
    %271 = arith.mulf %265, %269 : vector<8x32xf32>
    %272 = arith.addf %270, %271 : vector<8x32xf32>
    %273 = math.tanh %272 : vector<8x32xf32>
    %274 = arith.mulf %267, %273 : vector<8x32xf32>
    %275 = arith.truncf %274 : vector<8x32xf32> to vector<8x32xbf16>
    %cst_55 = arith.constant dense<0.000000e+00> : vector<8x128xf32>
    %276 = tpu.matmul %275, %172, %cst_55 {dimension_numbers = #tpu.dot_dimension_numbers<[1], [0], [0], [1], [0, 0, 1, 1], [], []>} : vector<8x32xbf16>, vector<32x128xbf16>, vector<8x128xf32> -> vector<8x128xf32>
    %277 = vector.extract_strided_slice %177 {offsets = [40, 0], sizes = [8, 128], strides = [1, 1]} : vector<64x128xf32> to vector<8x128xf32>
    %278 = arith.addf %276, %277 : vector<8x128xf32>
    %279 = arith.negf %278 : vector<8x128xf32>
    %280 = math.exp %279 : vector<8x128xf32>
    %cst_56 = arith.constant 1.000000e+00 : f32
    %281 = vector.broadcast %cst_56 : f32 to vector<8x128xf32>
    %282 = arith.addf %281, %280 : vector<8x128xf32>
    %283 = arith.divf %281, %282 : vector<8x128xf32>
    %284 = vector.extract_strided_slice %283 {offsets = [0, 0], sizes = [8, 32], strides = [1, 1]} : vector<8x128xf32> to vector<8x32xf32>
    %285 = vector.extract_strided_slice %283 {offsets = [0, 32], sizes = [8, 32], strides = [1, 1]} : vector<8x128xf32> to vector<8x32xf32>
    %286 = vector.extract_strided_slice %283 {offsets = [0, 96], sizes = [8, 32], strides = [1, 1]} : vector<8x128xf32> to vector<8x32xf32>
    %287 = vector.extract_strided_slice %278 {offsets = [0, 64], sizes = [8, 32], strides = [1, 1]} : vector<8x128xf32> to vector<8x32xf32>
    %288 = math.tanh %287 : vector<8x32xf32>
    %289 = arith.mulf %285, %272 : vector<8x32xf32>
    %290 = arith.mulf %284, %288 : vector<8x32xf32>
    %291 = arith.addf %289, %290 : vector<8x32xf32>
    %292 = math.tanh %291 : vector<8x32xf32>
    %293 = arith.mulf %286, %292 : vector<8x32xf32>
    %294 = arith.truncf %293 : vector<8x32xf32> to vector<8x32xbf16>
    %cst_57 = arith.constant dense<0.000000e+00> : vector<8x128xf32>
    %295 = tpu.matmul %294, %172, %cst_57 {dimension_numbers = #tpu.dot_dimension_numbers<[1], [0], [0], [1], [0, 0, 1, 1], [], []>} : vector<8x32xbf16>, vector<32x128xbf16>, vector<8x128xf32> -> vector<8x128xf32>
    %296 = vector.extract_strided_slice %177 {offsets = [48, 0], sizes = [8, 128], strides = [1, 1]} : vector<64x128xf32> to vector<8x128xf32>
    %297 = arith.addf %295, %296 : vector<8x128xf32>
    %298 = arith.negf %297 : vector<8x128xf32>
    %299 = math.exp %298 : vector<8x128xf32>
    %cst_58 = arith.constant 1.000000e+00 : f32
    %300 = vector.broadcast %cst_58 : f32 to vector<8x128xf32>
    %301 = arith.addf %300, %299 : vector<8x128xf32>
    %302 = arith.divf %300, %301 : vector<8x128xf32>
    %303 = vector.extract_strided_slice %302 {offsets = [0, 0], sizes = [8, 32], strides = [1, 1]} : vector<8x128xf32> to vector<8x32xf32>
    %304 = vector.extract_strided_slice %302 {offsets = [0, 32], sizes = [8, 32], strides = [1, 1]} : vector<8x128xf32> to vector<8x32xf32>
    %305 = vector.extract_strided_slice %302 {offsets = [0, 96], sizes = [8, 32], strides = [1, 1]} : vector<8x128xf32> to vector<8x32xf32>
    %306 = vector.extract_strided_slice %297 {offsets = [0, 64], sizes = [8, 32], strides = [1, 1]} : vector<8x128xf32> to vector<8x32xf32>
    %307 = math.tanh %306 : vector<8x32xf32>
    %308 = arith.mulf %304, %291 : vector<8x32xf32>
    %309 = arith.mulf %303, %307 : vector<8x32xf32>
    %310 = arith.addf %308, %309 : vector<8x32xf32>
    %311 = math.tanh %310 : vector<8x32xf32>
    %312 = arith.mulf %305, %311 : vector<8x32xf32>
    %313 = arith.truncf %312 : vector<8x32xf32> to vector<8x32xbf16>
    %cst_59 = arith.constant dense<0.000000e+00> : vector<8x128xf32>
    %314 = tpu.matmul %313, %172, %cst_59 {dimension_numbers = #tpu.dot_dimension_numbers<[1], [0], [0], [1], [0, 0, 1, 1], [], []>} : vector<8x32xbf16>, vector<32x128xbf16>, vector<8x128xf32> -> vector<8x128xf32>
    %315 = vector.extract_strided_slice %177 {offsets = [56, 0], sizes = [8, 128], strides = [1, 1]} : vector<64x128xf32> to vector<8x128xf32>
    %316 = arith.addf %314, %315 : vector<8x128xf32>
    %317 = arith.negf %316 : vector<8x128xf32>
    %318 = math.exp %317 : vector<8x128xf32>
    %cst_60 = arith.constant 1.000000e+00 : f32
    %319 = vector.broadcast %cst_60 : f32 to vector<8x128xf32>
    %320 = arith.addf %319, %318 : vector<8x128xf32>
    %321 = arith.divf %319, %320 : vector<8x128xf32>
    %322 = vector.extract_strided_slice %321 {offsets = [0, 0], sizes = [8, 32], strides = [1, 1]} : vector<8x128xf32> to vector<8x32xf32>
    %323 = vector.extract_strided_slice %321 {offsets = [0, 32], sizes = [8, 32], strides = [1, 1]} : vector<8x128xf32> to vector<8x32xf32>
    %324 = vector.extract_strided_slice %321 {offsets = [0, 96], sizes = [8, 32], strides = [1, 1]} : vector<8x128xf32> to vector<8x32xf32>
    %325 = vector.extract_strided_slice %316 {offsets = [0, 64], sizes = [8, 32], strides = [1, 1]} : vector<8x128xf32> to vector<8x32xf32>
    %326 = math.tanh %325 : vector<8x32xf32>
    %327 = arith.mulf %323, %310 : vector<8x32xf32>
    %328 = arith.mulf %322, %326 : vector<8x32xf32>
    %329 = arith.addf %327, %328 : vector<8x32xf32>
    %330 = math.tanh %329 : vector<8x32xf32>
    %331 = arith.mulf %324, %330 : vector<8x32xf32>
    %332 = arith.truncf %331 : vector<8x32xf32> to vector<8x32xbf16>
    %c0_61 = arith.constant 0 : index
    %c0_62 = arith.constant 0 : index
    %333 = vector.load %arg7[%c0_61, %c0_62] : memref<32x1xbf16, #tpu.memory_space<vmem>>, vector<32x1xbf16>
    %cst_63 = arith.constant dense<0.000000e+00> : vector<8x1xf32>
    %334 = tpu.matmul %332, %333, %cst_63 {dimension_numbers = #tpu.dot_dimension_numbers<[1], [0], [0], [1], [0, 0, 1, 1], [], []>} : vector<8x32xbf16>, vector<32x1xbf16>, vector<8x1xf32> -> vector<8x1xf32>
    %c0_64 = arith.constant 0 : index
    %c0_65 = arith.constant 0 : index
    %335 = vector.load %arg8[%c0_64, %c0_65] : memref<1x1xf32, #tpu.memory_space<vmem>>, vector<1x1xf32>
    %336 = vector.broadcast %335 : vector<1x1xf32> to vector<8x1xf32>
    %337 = arith.addf %334, %336 : vector<8x1xf32>
    %c0_66 = arith.constant 0 : index
    %c0_67 = arith.constant 0 : index
    %338 = vector.load %arg9[%c0_66, %c0_67] : memref<8x1xf32, #tpu.memory_space<vmem>>, vector<8x1xf32>
    tpu.vector_store %arg9[%c0_66, %c0_67], %337 {strides = array<i32>} : memref<8x1xf32, #tpu.memory_space<vmem>>, vector<8x1xf32>,
    return
  }
}

</mosaic_0001>

<bundles_post_ra>
// kernel: electric_lstm_forward.1
= control target key start
LH: loop header
LB: loop body
LE: loop exit
PB: predicated region body
PF: predicated region fallthrough
CT: control target
= control target key end

     0   :  { %vm72_vm0 = vcmask 1043456   ;;  %v1935_v1 = vmov 0.0   ;;  %vm1936_vm1 = vmmov 0   ;;  %vm59_vm2 = vcmask 64512   ;;  %s1938_s23 = smov 64   ;;  %s2360_s1 = inlined_call_operand.vmem [shape: bf16[8,128], index: 1, kind: input, shape index: {}]   ;;  %s2361_s2 = inlined_call_operand.vmem [shape: bf16[32,128], index: 2, kind: input, shape index: {}]   ;;  %s2362_s0 = inlined_call_operand.vmem [shape: f32[64,8], index: 0, kind: input, shape index: {}]   ;;  %s2363_s3 = inlined_call_operand.vmem [shape: f32[1,128], index: 3, kind: input, shape index: {}]   ;;  %s2364_s4 = inlined_call_operand.vmem [shape: bf16[32,128], index: 4, kind: input, shape index: {}]   ;;  %s2365_s5 = inlined_call_operand.vmem [shape: bf16[32,128], index: 5, kind: input, shape index: {}]   ;;  %s2366_s6 = inlined_call_operand.vmem [shape: f32[1,128], index: 6, kind: input, shape index: {}]   ;;  %s2367_s7 = inlined_call_operand.vmem [shape: bf16[32,1], index: 7, kind: input, shape index: {}]   ;;  %s2368_s8 = inlined_call_operand.<no memory space> [shape: f32[1,1], index: 8, kind: input, shape index: {}]   ;;  %s2369_s9 = inlined_call_operand.vmem [shape: f32[8,1], index: 9, kind: output, shape index: {}]  }
   0x1   :  { %v43_v0 = vld [vmem:[%s2360_s1] sm:$0xf]  ;;  %1645 = vmatprep.subr.bf16.mxu1 %v1935_v1  ;;  %1649 = vmatprep.mubr.msk.bf16.mxu1 %vm1936_vm1, %v1935_v1  ;;  %v1999_v3 = vld [vmem:[%s2361_s2 + $0x8] sm:$0xff]   ;;  %v37_v7 = vld [vmem:[%s2362_s0 + $0x10] sm:$0xff]  ;;  %v1937_v11 = vmov 0   ;;  %vm153_vm3 = vcmask 261120  }
   0x2   :  { %1793 = vmatprep.subr.msk.bf16.mxu0 %vm72_vm0, %v43_v0  ;;  %v74_v2 = vsel %vm72_vm0, %v43_v0, 0  ;;  %v35_v4 = vld [vmem:[%s2362_s0] sm:$0xff]  ;;  %v36_v5 = vld [vmem:[%s2362_s0 + $0x8] sm:$0xff]  ;;  %v38_v8 = vld [vmem:[%s2362_s0 + $0x18] sm:$0xff]  ;;  %1646 = vmatpush3.bf16.msra.mxu1 %v1999_v3  ;;  %vm1517_vm4 = vcmask 7168  }
   0x3   :  { %1636 = vmatpush3.bf16.msra.mxu0 %v74_v2  ;;  %v49_v6 = vpack.c.bf16 %v36_v5, %v35_v4  ;;  %v50_v9 = vpack.c.bf16 %v38_v8, %v37_v7  ;;  %v2017_v10 = vld [vmem:[%s2361_s2] sm:$0xff]   ;;  %1647 = vmatprep.subr.bf16.mxu1 %v1935_v1  ;;  %v40_v55 = vld [vmem:[%s2362_s0 + $0x28] sm:$0xff]  ;;  %v41_v56 = vld [vmem:[%s2362_s0 + $0x30] sm:$0xff] }
   0x4   :  { %1661 = vmatprep.subr.bf16.mxu0 %v1935_v1  ;;  %v2041_v13 = vld [vmem:[%s2363_s3] ss:$0 sm:$0xff]  ;;  %s1939_s3 = smov 32   ;;  %v42_v58 = vld [vmem:[%s2362_s0 + $0x38] sm:$0xff] }
   0x5   :  { %1637 = vmatprep.mubr.msk.bf16.mxu0 %vm59_vm2, %v49_v6  ;;  %v39_v54 = vld [vmem:[%s2362_s0 + $0x20] sm:$0xff]  ;;  %v52_v59 = vpack.c.bf16 %v42_v58, %v41_v56 }
   0x6   :  { %1638 = vmatmul.mubr.msk.bf16.vlgmr.msra.gmra.mxu0 %vm59_vm2, %v50_v9  ;;  %1648 = vmatpush3.bf16.msra.mxu1 %v2017_v10  ;;  %v51_v57 = vpack.c.bf16 %v40_v55, %v39_v54 }
   0x7   :  { %1662 = vmatpush3.bf16.msra.mxu0 %v1999_v3  ;;  %1653 = vmatprep.subr.bf16.mxu1 %v1935_v1 }
   0x8   :  { %1663 = vmatprep.subr.bf16.mxu0 %v1935_v1  ;;  %1641 = vmatprep.mubr.msk.bf16.mxu0 %vm59_vm2, %v51_v57 }
   0x9   :  { %1650 = vmatmul.mubr.bf16.vlgmr.msra.gmra.mxu1 %v1937_v11 }
   0xa   :  { %1654 = vmatpush3.bf16.msra.mxu1 %v1999_v3  ;;  %1657 = vmatprep.mubr.msk.bf16.mxu1 %vm1936_vm1, %v1935_v1 }
   0xb   :  { %1664 = vmatpush3.bf16.msra.mxu0 %v2017_v10  ;;  %1655 = vmatprep.subr.bf16.mxu1 %v1935_v1 }
   0xc   :  { %1677 = vmatprep.subr.bf16.mxu0 %v1935_v1 }
   0xe   :  { %1656 = vmatpush3.bf16.msra.mxu1 %v2017_v10  ;;  %1642 = vmatmul.mubr.msk.bf16.gmra.mxu0 %vm59_vm2, %v52_v59 }
   0xf   :  { %1669 = vmatprep.subr.bf16.mxu1 %v1935_v1  ;;  %1665 = vmatprep.mubr.msk.bf16.mxu0 %vm1936_vm1, %v1935_v1 }
  0xc6   :  { %v2036_v12 = vpop.f32.mrf.mxu0 }
  0xc7   :  { %v119_v7 = vadd.f32 %v2036_v12, %v2041_v13 }
  0xc8   :  { %v110_v14 = vpop.f32.mrf.mxu0 }
  0xc9   :  { %v111_v15 = vadd.f32 %v2041_v13, %v110_v14  ;;  %v191_v16 = vpop.f32.mrf.mxu1 }
  0xca   :  { %v2059_v36 = vpop.f32.mrf.mxu0 }
  0xcb   :  { %v192_v17 = vadd.f32 %v191_v16, %v111_v15  ;;  %v1651_v18 = vpop.f32.mrf.mxu1 }
  0xcc   :  { %v113_v37 = vpop.f32.mrf.mxu0 }
  0xcd   :  { %1807 = vtanh.f32 %v192_v17  ;;  %v194_v19 = vpop.f32.mrf.mxu1  ;;  %v1530_v22 = vmul.f32 -1.442695, %v192_v17  ;;  %v114_v38 = vadd.f32 %v2041_v13, %v113_v37 }
  0xce   :  { %v2093_v2 = vpop.f32.mrf.mxu0 }
  0xcf   :  { %v1652_v20 = vpop.f32.mrf.mxu1  ;;  %1809 = vpow2.f32 %v1530_v22 }
  0xd0   :  { %v2095_v4 = vpop.f32.mrf.mxu0 }
  0xd2   :  { %v2097_v5 = vpop.f32.mrf.mxu0 }
  0xd4   :  { %v2099_v6 = vpop.f32.mrf.mxu0 }
  0xda   :  { %v1808_v21 = vpop.eup %1807 }
  0xdb   :  { %206 = vrot.lane.b32.xlu0 %v1808_v21, %s1938_s23 }
  0xdc   :  { %v1810_v23 = vpop.eup %1809 }
  0xdd   :  { %v200_v24 = vadd.f32 1.0, %v1810_v23 }
  0xdf   :  { %1811 = vrcp.f32 %v200_v24 }
  0xec   :  { %v1812_v25 = vpop.eup %1811 }
  0xed   :  { %v204_v28 = vmul.f32 0.0, %v1812_v25 }
 0x14d   :  { %v207_v26 = vpop.permute.xlu0 %206 }
 0x14e   :  { %v209_v27 = vmul.f32 %v1812_v25, %v207_v26 }
 0x150   :  { %211 = vrot.lane.b32.xlu0 %v209_v27, %s1939_s3 }
 0x1c2   :  { %v212_v29 = vpop.permute.xlu0 %211 }
 0x1c3   :  { %v214_v30 = vadd.f32 %v212_v29, %v204_v28 }
 0x1c5   :  { %1813 = vtanh.f32 %v214_v30 }
 0x1d2   :  { %v1814_v31 = vpop.eup %1813 }
 0x1d3   :  { %217 = vrot.lane.b32.xlu1 %v1814_v31, %s1938_s23  ;;  %v122_v31 = vadd.f32 %v2059_v36, %v2041_v13 }
 0x245   :  { %v218_v32 = vpop.permute.xlu1 %217 }
 0x246   :  { %v2047_v33 = vmul.f32 %v1812_v25, %v218_v32 }
 0x248   :  { %v226_v34 = vpack.c.bf16 %v2047_v33, %v2047_v33 }
 0x24a   :  { %228 = vrot.lane.b32.xlu1 %v226_v34, %s1939_s3 }
 0x2bc   :  { %v229_v35 = vpop.permute.xlu1 %228 }
 0x2bd   :  { %1658 = vmatmul.mubr.msk.bf16.vlgmr.msra.gmra.mxu1 %vm153_vm3, %v229_v35 }
 0x2be   :  { %1670 = vmatpush3.bf16.msra.mxu1 %v1999_v3  ;;  %1673 = vmatprep.mubr.msk.bf16.mxu1 %vm1936_vm1, %v1935_v1 }
 0x2bf   :  { %1671 = vmatprep.subr.bf16.mxu1 %v1935_v1 }
 0x2c2   :  { %1672 = vmatpush3.bf16.msra.mxu1 %v2017_v10 }
 0x2c3   :  { %1685 = vmatprep.subr.bf16.mxu1 %v1935_v1 }
 0x37d   :  { %v267_v39 = vpop.f32.mrf.mxu1 }
 0x37e   :  { %v268_v40 = vadd.f32 %v267_v39, %v114_v38 }
 0x37f   :  { %v1659_v41 = vpop.f32.mrf.mxu1 }
 0x380   :  { %1815 = vtanh.f32 %v268_v40  ;;  %v1532_v45 = vmul.f32 -1.442695, %v268_v40 }
 0x381   :  { %v270_v42 = vpop.f32.mrf.mxu1 }
 0x382   :  { %1817 = vpow2.f32 %v1532_v45 }
 0x383   :  { %v1660_v43 = vpop.f32.mrf.mxu1 }
 0x38d   :  { %v1816_v44 = vpop.eup %1815 }
 0x38e   :  { %282 = vrot.lane.b32.xlu0 %v1816_v44, %s1938_s23 }
 0x38f   :  { %v1818_v46 = vpop.eup %1817 }
 0x390   :  { %v276_v47 = vadd.f32 1.0, %v1818_v46 }
 0x392   :  { %1819 = vrcp.f32 %v276_v47 }
 0x39f   :  { %v1820_v48 = vpop.eup %1819 }
 0x3a0   :  { %v280_v51 = vmul.f32 %v1820_v48, %v214_v30 }
 0x400   :  { %v283_v49 = vpop.permute.xlu0 %282 }
 0x401   :  { %v285_v50 = vmul.f32 %v1820_v48, %v283_v49 }
 0x403   :  { %287 = vrot.lane.b32.xlu1 %v285_v50, %s1939_s3 }
 0x475   :  { %v288_v52 = vpop.permute.xlu1 %287 }
 0x476   :  { %v290_v53 = vadd.f32 %v288_v52, %v280_v51 }
 0x478   :  { %1821 = vtanh.f32 %v290_v53 }
 0x485   :  { %v1822_v60 = vpop.eup %1821 }
 0x486   :  { %293 = vrot.lane.b32.xlu0 %v1822_v60, %s1938_s23 }
 0x4f8   :  { %v294_v61 = vpop.permute.xlu0 %293 }
 0x4f9   :  { %v2081_v62 = vmul.f32 %v1820_v48, %v294_v61 }
 0x4fb   :  { %v302_v63 = vpack.c.bf16 %v2081_v62, %v2081_v62 }
 0x4fd   :  { %304 = vrot.lane.b32.xlu1 %v302_v63, %s1939_s3 }
 0x56f   :  { %v305_v0 = vpop.permute.xlu1 %304 }
 0x570   :  { %1666 = vmatmul.mubr.msk.bf16.vlgmr.msra.gmra.mxu0 %vm153_vm3, %v305_v0 }
 0x571   :  { %1678 = vmatpush3.bf16.msra.mxu0 %v1999_v3  ;;  %1681 = vmatprep.mubr.msk.bf16.mxu0 %vm1936_vm1, %v1935_v1 }
 0x572   :  { %1679 = vmatprep.subr.bf16.mxu0 %v1935_v1 }
 0x575   :  { %1680 = vmatpush3.bf16.msra.mxu0 %v2017_v10 }
 0x576   :  { %1693 = vmatprep.subr.bf16.mxu0 %v1935_v1 }
 0x630   :  { %v343_v8 = vpop.f32.mrf.mxu0 }
 0x631   :  { %v344_v9 = vadd.f32 %v343_v8, %v119_v7 }
 0x632   :  { %v1667_v14 = vpop.f32.mrf.mxu0 }
 0x633   :  { %1823 = vtanh.f32 %v344_v9  ;;  %v1534_v18 = vmul.f32 -1.442695, %v344_v9 }
 0x634   :  { %v346_v15 = vpop.f32.mrf.mxu0 }
 0x635   :  { %1825 = vpow2.f32 %v1534_v18 }
 0x636   :  { %v1668_v16 = vpop.f32.mrf.mxu0 }
 0x640   :  { %v1824_v17 = vpop.eup %1823 }
 0x641   :  { %358 = vrot.lane.b32.xlu0 %v1824_v17, %s1938_s23 }
 0x642   :  { %v1826_v19 = vpop.eup %1825 }
 0x643   :  { %v352_v20 = vadd.f32 1.0, %v1826_v19 }
 0x645   :  { %1827 = vrcp.f32 %v352_v20  ;;  %v130_v20 = vadd.f32 %v2041_v13, %v2099_v6 }
 0x652   :  { %v1828_v21 = vpop.eup %1827 }
 0x653   :  { %v356_v12 = vmul.f32 %v1828_v21, %v290_v53  ;;  %v127_v53 = vadd.f32 %v2041_v13, %v2095_v4 }
 0x6b3   :  { %v359_v22 = vpop.permute.xlu0 %358 }
 0x6b4   :  { %v361_v23 = vmul.f32 %v1828_v21, %v359_v22 }
 0x6b6   :  { %363 = vrot.lane.b32.xlu1 %v361_v23, %s1939_s3 }
 0x728   :  { %v364_v24 = vpop.permute.xlu1 %363 }
 0x729   :  { %v366_v25 = vadd.f32 %v364_v24, %v356_v12 }
 0x72b   :  { %1829 = vtanh.f32 %v366_v25 }
 0x738   :  { %v1830_v26 = vpop.eup %1829 }
 0x739   :  { %369 = vrot.lane.b32.xlu0 %v1830_v26, %s1938_s23 }
 0x7ab   :  { %v370_v27 = vpop.permute.xlu0 %369 }
 0x7ac   :  { %v2106_v28 = vmul.f32 %v1828_v21, %v370_v27 }
 0x7ae   :  { %v378_v29 = vpack.c.bf16 %v2106_v28, %v2106_v28 }
 0x7b0   :  { %380 = vrot.lane.b32.xlu1 %v378_v29, %s1939_s3 }
 0x822   :  { %v381_v30 = vpop.permute.xlu1 %380 }
 0x823   :  { %1674 = vmatmul.mubr.msk.bf16.vlgmr.msra.gmra.mxu1 %vm153_vm3, %v381_v30 }
 0x824   :  { %1686 = vmatpush3.bf16.msra.mxu1 %v1999_v3  ;;  %1689 = vmatprep.mubr.msk.bf16.mxu1 %vm1936_vm1, %v1935_v1 }
 0x825   :  { %1687 = vmatprep.subr.bf16.mxu1 %v1935_v1 }
 0x828   :  { %1688 = vmatpush3.bf16.msra.mxu1 %v2017_v10 }
 0x829   :  { %1701 = vmatprep.subr.bf16.mxu1 %v1935_v1 }
 0x8e3   :  { %v419_v32 = vpop.f32.mrf.mxu1 }
 0x8e4   :  { %v420_v34 = vadd.f32 %v419_v32, %v122_v31 }
 0x8e5   :  { %v1675_v35 = vpop.f32.mrf.mxu1 }
 0x8e6   :  { %1831 = vtanh.f32 %v420_v34  ;;  %v1536_v40 = vmul.f32 -1.442695, %v420_v34 }
 0x8e7   :  { %v422_v37 = vpop.f32.mrf.mxu1 }
 0x8e8   :  { %1833 = vpow2.f32 %v1536_v40  ;;  %v135_v40 = vadd.f32 %v2093_v2, %v2041_v13 }
 0x8e9   :  { %v1676_v38 = vpop.f32.mrf.mxu1 }
 0x8f3   :  { %v1832_v39 = vpop.eup %1831 }
 0x8f4   :  { %434 = vrot.lane.b32.xlu0 %v1832_v39, %s1938_s23 }
 0x8f5   :  { %v1834_v41 = vpop.eup %1833 }
 0x8f6   :  { %v428_v42 = vadd.f32 1.0, %v1834_v41 }
 0x8f8   :  { %1835 = vrcp.f32 %v428_v42 }
 0x905   :  { %v1836_v43 = vpop.eup %1835 }
 0x906   :  { %v432_v36 = vmul.f32 %v1836_v43, %v366_v25 }
 0x966   :  { %v435_v44 = vpop.permute.xlu0 %434 }
 0x967   :  { %v437_v45 = vmul.f32 %v1836_v43, %v435_v44 }
 0x969   :  { %439 = vrot.lane.b32.xlu1 %v437_v45, %s1939_s3 }
 0x9db   :  { %v440_v46 = vpop.permute.xlu1 %439 }
 0x9dc   :  { %v442_v47 = vadd.f32 %v440_v46, %v432_v36 }
 0x9de   :  { %1837 = vtanh.f32 %v442_v47 }
 0x9eb   :  { %v1838_v48 = vpop.eup %1837 }
 0x9ec   :  { %445 = vrot.lane.b32.xlu0 %v1838_v48, %s1938_s23 }
 0xa5e   :  { %v446_v49 = vpop.permute.xlu0 %445 }
 0xa5f   :  { %v2123_v50 = vmul.f32 %v1836_v43, %v446_v49 }
 0xa61   :  { %v454_v51 = vpack.c.bf16 %v2123_v50, %v2123_v50 }
 0xa63   :  { %456 = vrot.lane.b32.xlu1 %v454_v51, %s1939_s3 }
 0xad5   :  { %v457_v52 = vpop.permute.xlu1 %456 }
 0xad6   :  { %1682 = vmatmul.mubr.msk.bf16.vlgmr.msra.gmra.mxu0 %vm153_vm3, %v457_v52 }
 0xad7   :  { %1694 = vmatpush3.bf16.msra.mxu0 %v1999_v3  ;;  %1697 = vmatprep.mubr.msk.bf16.mxu0 %vm1936_vm1, %v1935_v1 }
 0xad8   :  { %1695 = vmatprep.subr.bf16.mxu0 %v1935_v1 }
 0xadb   :  { %1696 = vmatpush3.bf16.msra.mxu0 %v2017_v10 }
 0xb96   :  { %v495_v54 = vpop.f32.mrf.mxu0 }
 0xb97   :  { %v496_v55 = vadd.f32 %v495_v54, %v127_v53 }
 0xb98   :  { %v1683_v56 = vpop.f32.mrf.mxu0 }
 0xb99   :  { %1839 = vtanh.f32 %v496_v55  ;;  %v1538_v60 = vmul.f32 -1.442695, %v496_v55 }
 0xb9a   :  { %v498_v57 = vpop.f32.mrf.mxu0 }
 0xb9b   :  { %1841 = vpow2.f32 %v1538_v60  ;;  %v1801_v57 = vld [vmem:[%s2364_s4 + $0x8] sm:$0xff]  }
 0xb9c   :  { %v1684_v58 = vpop.f32.mrf.mxu0  ;;  %1709 = vmatprep.subr.bf16.mxu0 %v1801_v57 }
 0xba6   :  { %v1840_v59 = vpop.eup %1839 }
 0xba7   :  { %510 = vrot.lane.b32.xlu0 %v1840_v59, %s1938_s23 }
 0xba8   :  { %v1842_v61 = vpop.eup %1841 }
 0xba9   :  { %v504_v63 = vadd.f32 1.0, %v1842_v61 }
 0xbab   :  { %1843 = vrcp.f32 %v504_v63 }
 0xbb8   :  { %v1844_v0 = vpop.eup %1843 }
 0xbb9   :  { %v508_v4 = vmul.f32 %v1844_v0, %v442_v47 }
 0xc19   :  { %v511_v7 = vpop.permute.xlu0 %510 }
 0xc1a   :  { %v513_v8 = vmul.f32 %v1844_v0, %v511_v7 }
 0xc1c   :  { %515 = vrot.lane.b32.xlu1 %v513_v8, %s1939_s3 }
 0xc8e   :  { %v516_v9 = vpop.permute.xlu1 %515 }
 0xc8f   :  { %v518_v14 = vadd.f32 %v516_v9, %v508_v4  ;;  %v2198_v9 = vld [vmem:[%s2365_s5 + $0x8] sm:$0xff]  }
 0xc91   :  { %1845 = vtanh.f32 %v518_v14 }
 0xc9e   :  { %v1846_v15 = vpop.eup %1845 }
 0xc9f   :  { %521 = vrot.lane.b32.xlu0 %v1846_v15, %s1938_s23 }
 0xd11   :  { %v522_v16 = vpop.permute.xlu0 %521 }
 0xd12   :  { %v2139_v17 = vmul.f32 %v1844_v0, %v522_v16  ;;  %v138_v16 = vadd.f32 %v2097_v5, %v2041_v13 }
 0xd14   :  { %v530_v18 = vpack.c.bf16 %v2139_v17, %v2139_v17 }
 0xd16   :  { %532 = vrot.lane.b32.xlu1 %v530_v18, %s1939_s3 }
 0xd88   :  { %v533_v19 = vpop.permute.xlu1 %532 }
 0xd89   :  { %1690 = vmatmul.mubr.msk.bf16.vlgmr.msra.gmra.mxu1 %vm153_vm3, %v533_v19 }
 0xd8a   :  { %1702 = vmatpush3.bf16.msra.mxu1 %v1999_v3  ;;  %1705 = vmatprep.mubr.msk.bf16.mxu1 %vm1936_vm1, %v1935_v1 }
 0xd8b   :  { %1703 = vmatprep.subr.bf16.mxu1 %v1935_v1 }
 0xd8e   :  { %1704 = vmatpush3.bf16.msra.mxu1 %v2017_v10 }
 0xd8f   :  { %1721 = vmatprep.subr.bf16.mxu1 %v1935_v1 }
 0xe49   :  { %v571_v21 = vpop.f32.mrf.mxu1 }
 0xe4a   :  { %v572_v22 = vadd.f32 %v571_v21, %v130_v20 }
 0xe4b   :  { %v1691_v23 = vpop.f32.mrf.mxu1 }
 0xe4c   :  { %1847 = vtanh.f32 %v572_v22  ;;  %v1540_v3 = vmul.f32 -1.442695, %v572_v22  ;;  %v2231_v23 = vld [vmem:[%s2366_s6] ss:$0 sm:$0xff] }
 0xe4d   :  { %v574_v12 = vpop.f32.mrf.mxu1 }
 0xe4e   :  { %1849 = vpow2.f32 %v1540_v3 }
 0xe4f   :  { %v1692_v24 = vpop.f32.mrf.mxu1 }
 0xe59   :  { %v1848_v25 = vpop.eup %1847 }
 0xe5a   :  { %586 = vrot.lane.b32.xlu0 %v1848_v25, %s1938_s23 }
 0xe5b   :  { %v1850_v26 = vpop.eup %1849 }
 0xe5c   :  { %v580_v27 = vadd.f32 1.0, %v1850_v26 }
 0xe5e   :  { %1851 = vrcp.f32 %v580_v27 }
 0xe6b   :  { %v1852_v10 = vpop.eup %1851 }
 0xe6c   :  { %v584_v6 = vmul.f32 %v1852_v10, %v518_v14  ;;  %v2206_v14 = vld [vmem:[%s2365_s5] sm:$0xff]  }
 0xecc   :  { %v587_v29 = vpop.permute.xlu0 %586 }
 0xecd   :  { %v589_v30 = vmul.f32 %v1852_v10, %v587_v29 }
 0xecf   :  { %591 = vrot.lane.b32.xlu1 %v589_v30, %s1939_s3 }
 0xf41   :  { %v592_v31 = vpop.permute.xlu1 %591 }
 0xf42   :  { %v594_v32 = vadd.f32 %v592_v31, %v584_v6 }
 0xf44   :  { %1853 = vtanh.f32 %v594_v32 }
 0xf51   :  { %v1854_v34 = vpop.eup %1853 }
 0xf52   :  { %597 = vrot.lane.b32.xlu0 %v1854_v34, %s1938_s23 }
 0xfc4   :  { %v598_v35 = vpop.permute.xlu0 %597 }
 0xfc5   :  { %v2156_v37 = vmul.f32 %v1852_v10, %v598_v35 }
 0xfc7   :  { %v606_v38 = vpack.c.bf16 %v2156_v37, %v2156_v37 }
 0xfc9   :  { %608 = vrot.lane.b32.xlu1 %v606_v38, %s1939_s3 }
0x103b   :  { %v609_v39 = vpop.permute.xlu1 %608 }
0x103c   :  { %1698 = vmatmul.mubr.msk.bf16.vlgmr.msra.gmra.mxu0 %vm153_vm3, %v609_v39 }
0x103d   :  { %1710 = vmatpush3.bf16.msra.mxu0 %v1801_v57 }
0x10fc   :  { %v647_v41 = vpop.f32.mrf.mxu0 }
0x10fd   :  { %v648_v42 = vadd.f32 %v647_v41, %v135_v40 }
0x10fe   :  { %v1699_v43 = vpop.f32.mrf.mxu0 }
0x10ff   :  { %1855 = vtanh.f32 %v648_v42  ;;  %v1542_v46 = vmul.f32 -1.442695, %v648_v42 }
0x1100   :  { %v650_v44 = vpop.f32.mrf.mxu0 }
0x1101   :  { %1857 = vpow2.f32 %v1542_v46 }
0x1102   :  { %v1700_v45 = vpop.f32.mrf.mxu0 }
0x110c   :  { %v1856_v36 = vpop.eup %1855 }
0x110d   :  { %662 = vrot.lane.b32.xlu0 %v1856_v36, %s1938_s23 }
0x110e   :  { %v1858_v47 = vpop.eup %1857 }
0x110f   :  { %v656_v48 = vadd.f32 1.0, %v1858_v47 }
0x1111   :  { %1859 = vrcp.f32 %v656_v48 }
0x111e   :  { %v1860_v49 = vpop.eup %1859 }
0x111f   :  { %v660_v2 = vmul.f32 %v1860_v49, %v594_v32 }
0x117f   :  { %v663_v51 = vpop.permute.xlu0 %662 }
0x1180   :  { %v665_v52 = vmul.f32 %v1860_v49, %v663_v51 }
0x1182   :  { %667 = vrot.lane.b32.xlu1 %v665_v52, %s1939_s3 }
0x1186   :  { %222 = vrot.lane.b32.xlu1 %v2047_v33, %s1939_s3  ;;  %v1802_v33 = vld [vmem:[%s2364_s4] sm:$0xff]  }
0x1187   :  { %1711 = vmatprep.subr.bf16.mxu0 %v1802_v33 }
0x1188   :  { %1712 = vmatpush3.bf16.msra.mxu0 %v1802_v33 }
0x1189   :  { %1737 = vmatprep.subr.bf16.mxu0 %v1935_v1 }
0x118a   :  { %374 = vrot.lane.b32.xlu1 %v2106_v28, %s1939_s3 }
0x11f4   :  { %v668_v53 = vpop.permute.xlu1 %667 }
0x11f5   :  { %v2170_v54 = vadd.f32 %v668_v53, %v660_v2 }
0x11f7   :  { %1861 = vtanh.f32 %v2170_v54 }
0x11f8   :  { %v223_v55 = vpop.permute.xlu1 %222 }
0x11f9   :  { %225 = vst.msk [vmem:[#allocation2] sm:$0xff] %vm153_vm3, %v223_v55 }
0x11fc   :  { %v375_v56 = vpop.permute.xlu1 %374 }
0x11fd   :  { %377 = vst.msk [vmem:[#allocation2 + $0x10] sm:$0xff] %vm153_vm3, %v375_v56 }
0x1200   :  { %v758_v0 = vld [vmem:[#allocation2] sm:$0xff] }
0x1204   :  { %v1862_v28 = vpop.eup %1861 }
0x1205   :  { %673 = vrot.lane.b32.xlu0 %v1862_v28, %s1938_s23 }
0x1209   :  { %298 = vrot.lane.b32.xlu0 %v2081_v62, %s1939_s3 }
0x120d   :  { %450 = vrot.lane.b32.xlu0 %v2123_v50, %s1939_s3  ;;  %v760_v50 = vld [vmem:[#allocation2 + $0x10] sm:$0xff] }
0x1277   :  { %v674_v58 = vpop.permute.xlu0 %673 }
0x1278   :  { %v2187_v59 = vmul.f32 %v1860_v49, %v674_v58 }
0x127a   :  { %v682_v60 = vpack.c.bf16 %v2187_v59, %v2187_v59 }
0x127b   :  { %v299_v61 = vpop.permute.xlu0 %298 }
0x127c   :  { %301 = vst.msk [vmem:[#allocation2 + $0x8] sm:$0xff] %vm153_vm3, %v299_v61  ;;  %684 = vrot.lane.b32.xlu1 %v682_v60, %s1939_s3 }
0x127f   :  { %v451_v63 = vpop.permute.xlu0 %450 }
0x1280   :  { %453 = vst.msk [vmem:[#allocation2 + $0x18] sm:$0xff] %vm153_vm3, %v451_v63 }
0x1283   :  { %v759_v7 = vld [vmem:[#allocation2 + $0x8] sm:$0xff] }
0x1284   :  { %v775_v62 = vpack.c.bf16 %v759_v7, %v758_v0 }
0x1286   :  { %1713 = vmatprep.mubr.msk.bf16.mxu0 %vm153_vm3, %v775_v62 }
0x1287   :  { %v761_v8 = vld [vmem:[#allocation2 + $0x18] sm:$0xff] }
0x1288   :  { %v776_v4 = vpack.c.bf16 %v761_v8, %v760_v50 }
0x128a   :  { %1714 = vmatmul.mubr.msk.bf16.vlgmr.msra.gmra.mxu0 %vm153_vm3, %v776_v4 }
0x128b   :  { %1738 = vmatpush3.bf16.msra.mxu0 %v2198_v9 }
0x128c   :  { %1739 = vmatprep.subr.bf16.mxu0 %v1935_v1 }
0x128f   :  { %1740 = vmatpush3.bf16.msra.mxu0 %v2206_v14 }
0x1290   :  { %1753 = vmatprep.subr.bf16.mxu0 %v1935_v1 }
0x12ee   :  { %v685_v15 = vpop.permute.xlu1 %684 }
0x12ef   :  { %1706 = vmatmul.mubr.msk.bf16.vlgmr.msra.gmra.mxu1 %vm153_vm3, %v685_v15 }
0x12f0   :  { %1722 = vmatpush3.bf16.msra.mxu1 %v2198_v9  ;;  %1725 = vmatprep.mubr.msk.bf16.mxu1 %vm1936_vm1, %v1935_v1 }
0x12f1   :  { %1723 = vmatprep.subr.bf16.mxu1 %v1935_v1 }
0x12f4   :  { %1724 = vmatpush3.bf16.msra.mxu1 %v2206_v14 }
0x12f5   :  { %1729 = vmatprep.subr.bf16.mxu1 %v1935_v1 }
0x12f7   :  { %1726 = vmatmul.mubr.bf16.vlgmr.msra.gmra.mxu1 %v1937_v11 }
0x12f8   :  { %1730 = vmatpush3.bf16.msra.mxu1 %v2198_v9  ;;  %1733 = vmatprep.mubr.msk.bf16.mxu1 %vm1936_vm1, %v1935_v1 }
0x12f9   :  { %1731 = vmatprep.subr.bf16.mxu1 %v1935_v1 }
0x12fc   :  { %1732 = vmatpush3.bf16.msra.mxu1 %v2206_v14 }
0x12fd   :  { %1745 = vmatprep.subr.bf16.mxu1 %v1935_v1 }
0x134a   :  { %v2226_v18 = vpop.f32.mrf.mxu0 }
0x134c   :  { %v843_v11 = vpop.f32.mrf.mxu0 }
0x134d   :  { %v844_v24 = vadd.f32 %v2231_v23, %v843_v11 }
0x134e   :  { %v2255_v57 = vpop.f32.mrf.mxu0 }
0x1350   :  { %v846_v33 = vpop.f32.mrf.mxu0 }
0x1351   :  { %v847_v28 = vadd.f32 %v2231_v23, %v846_v33 }
0x13af   :  { %v723_v19 = vpop.f32.mrf.mxu1 }
0x13b0   :  { %v724_v20 = vadd.f32 %v723_v19, %v138_v16 }
0x13b1   :  { %v1707_v21 = vpop.f32.mrf.mxu1 }
0x13b2   :  { %v1544_v41 = vmul.f32 -1.442695, %v724_v20 }
0x13b3   :  { %v726_v22 = vpop.f32.mrf.mxu1 }
0x13b5   :  { %v1708_v12 = vpop.f32.mrf.mxu1 }
0x13b7   :  { %v920_v25 = vpop.f32.mrf.mxu1 }
0x13b8   :  { %v921_v3 = vadd.f32 %v920_v25, %v844_v24 }
0x13b9   :  { %v1727_v26 = vpop.f32.mrf.mxu1 }
0x13ba   :  { %1863 = vtanh.f32 %v921_v3  ;;  %v1554_v10 = vmul.f32 -1.442695, %v921_v3 }
0x13bb   :  { %v923_v13 = vpop.f32.mrf.mxu1 }
0x13bc   :  { %1865 = vpow2.f32 %v1554_v10 }
0x13bd   :  { %v1728_v5 = vpop.f32.mrf.mxu1 }
0x13c7   :  { %v1864_v27 = vpop.eup %1863 }
0x13c8   :  { %935 = vrot.lane.b32.xlu0 %v1864_v27, %s1938_s23 }
0x13c9   :  { %v1866_v29 = vpop.eup %1865 }
0x13ca   :  { %v929_v30 = vadd.f32 1.0, %v1866_v29 }
0x13cc   :  { %1867 = vrcp.f32 %v929_v30 }
0x13d9   :  { %v1868_v6 = vpop.eup %1867 }
0x13da   :  { %v933_v34 = vmul.f32 0.0, %v1868_v6 }
0x143a   :  { %v936_v31 = vpop.permute.xlu0 %935 }
0x143b   :  { %v938_v32 = vmul.f32 %v1868_v6, %v936_v31 }
0x143d   :  { %940 = vrot.lane.b32.xlu1 %v938_v32, %s1939_s3  ;;  %v852_v32 = vadd.f32 %v2226_v18, %v2231_v23 }
0x14af   :  { %v941_v35 = vpop.permute.xlu1 %940 }
0x14b0   :  { %v943_v38 = vadd.f32 %v941_v35, %v933_v34 }
0x14b2   :  { %1869 = vtanh.f32 %v943_v38 }
0x14b3   :  { %1871 = vtanh.f32 %v724_v20 }
0x14b4   :  { %1873 = vpow2.f32 %v1544_v41 }
0x14bf   :  { %v1870_v39 = vpop.eup %1869 }
0x14c0   :  { %946 = vrot.lane.b32.xlu0 %v1870_v39, %s1938_s23  ;;  %v1872_v40 = vpop.eup %1871 }
0x14c1   :  { %v1874_v42 = vpop.eup %1873 }
0x14c2   :  { %v732_v43 = vadd.f32 1.0, %v1874_v42 }
0x14c4   :  { %738 = vrot.lane.b32.xlu0 %v1872_v40, %s1938_s23  ;;  %1875 = vrcp.f32 %v732_v43 }
0x14d1   :  { %v1876_v46 = vpop.eup %1875 }
0x14d2   :  { %v736_v51 = vmul.f32 %v1876_v46, %v2170_v54 }
0x1532   :  { %v947_v44 = vpop.permute.xlu0 %946 }
0x1533   :  { %v949_v45 = vmul.f32 %v1868_v6, %v947_v44 }
0x1535   :  { %v950_v36 = vpack.c.bf16 %v949_v45, %v949_v45 }
0x1536   :  { %v739_v47 = vpop.permute.xlu0 %738 }
0x1537   :  { %v741_v48 = vmul.f32 %v1876_v46, %v739_v47  ;;  %952 = vrot.lane.b32.xlu1 %v950_v36, %s1939_s3 }
0x1539   :  { %743 = vrot.lane.b32.xlu0 %v741_v48, %s1939_s3 }
0x15a9   :  { %v953_v49 = vpop.permute.xlu1 %952 }
0x15aa   :  { %1734 = vmatmul.mubr.msk.bf16.vlgmr.msra.gmra.mxu1 %vm153_vm3, %v953_v49 }
0x15ab   :  { %v744_v52 = vpop.permute.xlu0 %743  ;;  %1746 = vmatpush3.bf16.msra.mxu1 %v2198_v9  ;;  %1749 = vmatprep.mubr.msk.bf16.mxu1 %vm1936_vm1, %v1935_v1 }
0x15ac   :  { %v746_v2 = vadd.f32 %v744_v52, %v736_v51  ;;  %1747 = vmatprep.subr.bf16.mxu1 %v1935_v1 }
0x15ae   :  { %1877 = vtanh.f32 %v746_v2 }
0x15af   :  { %1748 = vmatpush3.bf16.msra.mxu1 %v2206_v14 }
0x15b0   :  { %1761 = vmatprep.subr.bf16.mxu1 %v1935_v1 }
0x15bb   :  { %v1878_v53 = vpop.eup %1877 }
0x15bc   :  { %749 = vrot.lane.b32.xlu0 %v1878_v53, %s1938_s23 }
0x15c0   :  { %526 = vrot.lane.b32.xlu0 %v2139_v17, %s1939_s3 }
0x15c4   :  { %678 = vrot.lane.b32.xlu0 %v2187_v59, %s1939_s3 }
0x162e   :  { %v750_v54 = vpop.permute.xlu0 %749 }
0x162f   :  { %v752_v21 = vmul.f32 %v1876_v46, %v750_v54  ;;  %v855_v54 = vadd.f32 %v2255_v57, %v2231_v23 }
0x1632   :  { %v527_v55 = vpop.permute.xlu0 %526 }
0x1633   :  { %529 = vst.msk [vmem:[#allocation2 + $0x20] sm:$0xff] %vm153_vm3, %v527_v55 }
0x1636   :  { %v679_v56 = vpop.permute.xlu0 %678 }
0x1637   :  { %681 = vst.msk [vmem:[#allocation2 + $0x30] sm:$0xff] %vm153_vm3, %v679_v56 }
0x163a   :  { %v762_v3 = vld [vmem:[#allocation2 + $0x20] sm:$0xff] }
0x166a   :  { %v991_v58 = vpop.f32.mrf.mxu1 }
0x166b   :  { %v992_v60 = vadd.f32 %v991_v58, %v847_v28 }
0x166c   :  { %v1735_v61 = vpop.f32.mrf.mxu1 }
0x166d   :  { %1879 = vtanh.f32 %v992_v60  ;;  %v1556_v59 = vmul.f32 -1.442695, %v992_v60 }
0x166e   :  { %v994_v17 = vpop.f32.mrf.mxu1 }
0x166f   :  { %1881 = vpow2.f32 %v1556_v59 }
0x1670   :  { %v1736_v63 = vpop.f32.mrf.mxu1 }
0x167a   :  { %v1880_v0 = vpop.eup %1879 }
0x167b   :  { %1006 = vrot.lane.b32.xlu1 %v1880_v0, %s1938_s23 }
0x167c   :  { %v1882_v7 = vpop.eup %1881 }
0x167d   :  { %v1000_v62 = vadd.f32 1.0, %v1882_v7 }
0x167f   :  { %1883 = vrcp.f32 %v1000_v62 }
0x168c   :  { %v1884_v50 = vpop.eup %1883 }
0x168d   :  { %v1004_v15 = vmul.f32 %v1884_v50, %v943_v38 }
0x16ed   :  { %v1007_v8 = vpop.permute.xlu1 %1006 }
0x16ee   :  { %v1009_v4 = vmul.f32 %v1884_v50, %v1007_v8 }
0x16f0   :  { %1011 = vrot.lane.b32.xlu1 %v1009_v4, %s1939_s3 }
0x1762   :  { %v1012_v16 = vpop.permute.xlu1 %1011 }
0x1763   :  { %v1014_v19 = vadd.f32 %v1012_v16, %v1004_v15 }
0x1765   :  { %1885 = vtanh.f32 %v1014_v19 }
0x1772   :  { %v1886_v20 = vpop.eup %1885 }
0x1773   :  { %1017 = vrot.lane.b32.xlu1 %v1886_v20, %s1938_s23 }
0x1777   :  { %602 = vrot.lane.b32.xlu1 %v2156_v37, %s1939_s3  ;;  %v764_v37 = vld [vmem:[#allocation2 + $0x30] sm:$0xff] }
0x177b   :  { %754 = vrot.lane.b32.xlu1 %v752_v21, %s1939_s3 }
0x17e5   :  { %v1018_v11 = vpop.permute.xlu1 %1017 }
0x17e6   :  { %v1020_v22 = vmul.f32 %v1884_v50, %v1018_v11 }
0x17e8   :  { %v1021_v12 = vpack.c.bf16 %v1020_v22, %v1020_v22 }
0x17e9   :  { %v603_v24 = vpop.permute.xlu1 %602 }
0x17ea   :  { %605 = vst.msk [vmem:[#allocation2 + $0x28] sm:$0xff] %vm153_vm3, %v603_v24  ;;  %1023 = vrot.lane.b32.xlu0 %v1021_v12, %s1939_s3 }
0x17ed   :  { %v755_v25 = vpop.permute.xlu1 %754 }
0x17ee   :  { %757 = vst.msk [vmem:[#allocation2 + $0x38] sm:$0xff] %vm153_vm3, %v755_v25 }
0x17f1   :  { %v763_v26 = vld [vmem:[#allocation2 + $0x28] sm:$0xff] }
0x17f2   :  { %v777_v13 = vpack.c.bf16 %v763_v26, %v762_v3 }
0x17f4   :  { %1717 = vmatprep.mubr.msk.bf16.mxu0 %vm153_vm3, %v777_v13 }
0x17f5   :  { %v765_v5 = vld [vmem:[#allocation2 + $0x38] sm:$0xff] }
0x17f6   :  { %v778_v27 = vpack.c.bf16 %v765_v5, %v764_v37 }
0x17f8   :  { %1718 = vmatmul.mubr.msk.bf16.gmra.mxu0 %vm153_vm3, %v778_v27 }
0x17f9   :  { %1741 = vmatprep.mubr.msk.bf16.mxu0 %vm1936_vm1, %v1935_v1 }
0x185c   :  { %v1024_v10 = vpop.permute.xlu0 %1023 }
0x185d   :  { %1742 = vmatmul.mubr.msk.bf16.vlgmr.msra.gmra.mxu0 %vm153_vm3, %v1024_v10 }
0x185e   :  { %1754 = vmatpush3.bf16.msra.mxu0 %v2198_v9  ;;  %1757 = vmatprep.mubr.msk.bf16.mxu0 %vm1936_vm1, %v1935_v1 }
0x185f   :  { %1755 = vmatprep.subr.bf16.mxu0 %v1935_v1 }
0x1862   :  { %1756 = vmatpush3.bf16.msra.mxu0 %v2206_v14 }
0x1863   :  { %1769 = vmatprep.subr.bf16.mxu0 %v1935_v1 }
0x18b8   :  { %v2278_v29 = vpop.f32.mrf.mxu0 }
0x18ba   :  { %v2280_v30 = vpop.f32.mrf.mxu0 }
0x18bb   :  { %v860_v20 = vadd.f32 %v2231_v23, %v2280_v30 }
0x18bc   :  { %v2282_v6 = vpop.f32.mrf.mxu0 }
0x18be   :  { %v2284_v31 = vpop.f32.mrf.mxu0 }
0x191d   :  { %v1062_v34 = vpop.f32.mrf.mxu0 }
0x191e   :  { %v1063_v35 = vadd.f32 %v1062_v34, %v852_v32 }
0x191f   :  { %v1743_v38 = vpop.f32.mrf.mxu0 }
0x1920   :  { %1887 = vtanh.f32 %v1063_v35  ;;  %v1558_v42 = vmul.f32 -1.442695, %v1063_v35 }
0x1921   :  { %v1065_v39 = vpop.f32.mrf.mxu0 }
0x1922   :  { %1889 = vpow2.f32 %v1558_v42 }
0x1923   :  { %v1744_v40 = vpop.f32.mrf.mxu0 }
0x192d   :  { %v1888_v41 = vpop.eup %1887 }
0x192e   :  { %1077 = vrot.lane.b32.xlu1 %v1888_v41, %s1938_s23  ;;  %v863_v41 = vadd.f32 %v2231_v23, %v2284_v31 }
0x192f   :  { %v1890_v43 = vpop.eup %1889 }
0x1930   :  { %v1071_v44 = vadd.f32 1.0, %v1890_v43 }
0x1932   :  { %1891 = vrcp.f32 %v1071_v44 }
0x193f   :  { %v1892_v45 = vpop.eup %1891 }
0x1940   :  { %v1075_v18 = vmul.f32 %v1892_v45, %v1014_v19 }
0x19a0   :  { %v1078_v36 = vpop.permute.xlu1 %1077 }
0x19a1   :  { %v1080_v46 = vmul.f32 %v1892_v45, %v1078_v36 }
0x19a3   :  { %1082 = vrot.lane.b32.xlu0 %v1080_v46, %s1939_s3 }
0x1a15   :  { %v1083_v47 = vpop.permute.xlu0 %1082 }
0x1a16   :  { %v1085_v48 = vadd.f32 %v1083_v47, %v1075_v18 }
0x1a18   :  { %1893 = vtanh.f32 %v1085_v48 }
0x1a25   :  { %v1894_v49 = vpop.eup %1893 }
0x1a26   :  { %1088 = vrot.lane.b32.xlu1 %v1894_v49, %s1938_s23 }
0x1a98   :  { %v1089_v51 = vpop.permute.xlu1 %1088 }
0x1a99   :  { %v1091_v52 = vmul.f32 %v1892_v45, %v1089_v51 }
0x1a9b   :  { %v1092_v2 = vpack.c.bf16 %v1091_v52, %v1091_v52 }
0x1a9d   :  { %1094 = vrot.lane.b32.xlu0 %v1092_v2, %s1939_s3 }
0x1b0f   :  { %v1095_v53 = vpop.permute.xlu0 %1094 }
0x1b10   :  { %1750 = vmatmul.mubr.msk.bf16.vlgmr.msra.gmra.mxu1 %vm153_vm3, %v1095_v53 }
0x1b11   :  { %1762 = vmatpush3.bf16.msra.mxu1 %v2198_v9  ;;  %1765 = vmatprep.mubr.msk.bf16.mxu1 %vm1936_vm1, %v1935_v1 }
0x1b12   :  { %1763 = vmatprep.subr.bf16.mxu1 %v1935_v1 }
0x1b15   :  { %1764 = vmatpush3.bf16.msra.mxu1 %v2206_v14 }
0x1b16   :  { %1777 = vmatprep.subr.bf16.mxu1 %v1935_v1 }
0x1bd0   :  { %v1133_v55 = vpop.f32.mrf.mxu1 }
0x1bd1   :  { %v1134_v56 = vadd.f32 %v1133_v55, %v855_v54 }
0x1bd2   :  { %v1751_v33 = vpop.f32.mrf.mxu1 }
0x1bd3   :  { %1895 = vtanh.f32 %v1134_v56  ;;  %v1560_v61 = vmul.f32 -1.442695, %v1134_v56  ;;  %v868_v33 = vadd.f32 %v2278_v29, %v2231_v23 }
0x1bd4   :  { %v1136_v28 = vpop.f32.mrf.mxu1 }
0x1bd5   :  { %1897 = vpow2.f32 %v1560_v61 }
0x1bd6   :  { %v1752_v58 = vpop.f32.mrf.mxu1 }
0x1be0   :  { %v1896_v60 = vpop.eup %1895 }
0x1be1   :  { %1148 = vrot.lane.b32.xlu1 %v1896_v60, %s1938_s23 }
0x1be2   :  { %v1898_v17 = vpop.eup %1897 }
0x1be3   :  { %v1142_v63 = vadd.f32 1.0, %v1898_v17 }
0x1be5   :  { %1899 = vrcp.f32 %v1142_v63 }
0x1bf2   :  { %v1900_v0 = vpop.eup %1899 }
0x1bf3   :  { %v1146_v57 = vmul.f32 %v1900_v0, %v1085_v48 }
0x1c53   :  { %v1149_v59 = vpop.permute.xlu1 %1148 }
0x1c54   :  { %v1151_v7 = vmul.f32 %v1900_v0, %v1149_v59 }
0x1c56   :  { %1153 = vrot.lane.b32.xlu0 %v1151_v7, %s1939_s3 }
0x1cc8   :  { %v1154_v62 = vpop.permute.xlu0 %1153 }
0x1cc9   :  { %v1156_v50 = vadd.f32 %v1154_v62, %v1146_v57 }
0x1ccb   :  { %1901 = vtanh.f32 %v1156_v50 }
0x1cd8   :  { %v1902_v8 = vpop.eup %1901 }
0x1cd9   :  { %1159 = vrot.lane.b32.xlu1 %v1902_v8, %s1938_s23 }
0x1d4b   :  { %v1160_v4 = vpop.permute.xlu1 %1159 }
0x1d4c   :  { %v1162_v15 = vmul.f32 %v1900_v0, %v1160_v4 }
0x1d4e   :  { %v1163_v16 = vpack.c.bf16 %v1162_v15, %v1162_v15 }
0x1d50   :  { %1165 = vrot.lane.b32.xlu0 %v1163_v16, %s1939_s3 }
0x1dc2   :  { %v1166_v19 = vpop.permute.xlu0 %1165 }
0x1dc3   :  { %1758 = vmatmul.mubr.msk.bf16.vlgmr.msra.gmra.mxu0 %vm153_vm3, %v1166_v19 }
0x1dc4   :  { %1770 = vmatpush3.bf16.msra.mxu0 %v2198_v9  ;;  %1773 = vmatprep.mubr.msk.bf16.mxu0 %vm1936_vm1, %v1935_v1 }
0x1dc5   :  { %1771 = vmatprep.subr.bf16.mxu0 %v1935_v1 }
0x1dc8   :  { %1772 = vmatpush3.bf16.msra.mxu0 %v2206_v14 }
0x1dc9   :  { %1785 = vmatprep.subr.bf16.mxu0 %v1935_v1 }
0x1e83   :  { %v1204_v21 = vpop.f32.mrf.mxu0 }
0x1e84   :  { %v1205_v11 = vadd.f32 %v1204_v21, %v860_v20 }
0x1e85   :  { %v1759_v22 = vpop.f32.mrf.mxu0 }
0x1e86   :  { %1903 = vtanh.f32 %v1205_v11  ;;  %v1562_v3 = vmul.f32 -1.442695, %v1205_v11  ;;  %v871_v11 = vadd.f32 %v2282_v6, %v2231_v23 }
0x1e87   :  { %v1207_v12 = vpop.f32.mrf.mxu0 }
0x1e88   :  { %1905 = vpow2.f32 %v1562_v3 }
0x1e89   :  { %v1760_v24 = vpop.f32.mrf.mxu0 }
0x1e93   :  { %v1904_v25 = vpop.eup %1903 }
0x1e94   :  { %1219 = vrot.lane.b32.xlu1 %v1904_v25, %s1938_s23 }
0x1e95   :  { %v1906_v26 = vpop.eup %1905 }
0x1e96   :  { %v1213_v13 = vadd.f32 1.0, %v1906_v26 }
0x1e98   :  { %1907 = vrcp.f32 %v1213_v13 }
0x1ea5   :  { %v1908_v37 = vpop.eup %1907 }
0x1ea6   :  { %v1217_v10 = vmul.f32 %v1908_v37, %v1156_v50 }
0x1f06   :  { %v1220_v5 = vpop.permute.xlu1 %1219 }
0x1f07   :  { %v1222_v27 = vmul.f32 %v1908_v37, %v1220_v5 }
0x1f09   :  { %1224 = vrot.lane.b32.xlu0 %v1222_v27, %s1939_s3 }
0x1f7b   :  { %v1225_v30 = vpop.permute.xlu0 %1224 }
0x1f7c   :  { %v1227_v32 = vadd.f32 %v1225_v30, %v1217_v10 }
0x1f7e   :  { %1909 = vtanh.f32 %v1227_v32 }
0x1f8b   :  { %v1910_v34 = vpop.eup %1909 }
0x1f8c   :  { %1230 = vrot.lane.b32.xlu1 %v1910_v34, %s1938_s23  ;;  %v1805_v34 = vld [vmem:[%s2367_s7 + $0x8] sm:$0xff]  }
0x1ffe   :  { %v1231_v35 = vpop.permute.xlu1 %1230 }
0x1fff   :  { %v1233_v38 = vmul.f32 %v1908_v37, %v1231_v35  ;;  %v1806_v35 = vld [vmem:[%s2367_s7] sm:$0xff]  }
0x2001   :  { %v1234_v39 = vpack.c.bf16 %v1233_v38, %v1233_v38 }
0x2003   :  { %1236 = vrot.lane.b32.xlu0 %v1234_v39, %s1939_s3  ;;  %v14_v39 = vstv %s2368_s8 }
0x2004   :  { %15 = vst [vmem:[#allocation3] sm:$0x1] %v14_v39 }
0x2075   :  { %v1237_v40 = vpop.permute.xlu0 %1236 }
0x2076   :  { %1766 = vmatmul.mubr.msk.bf16.vlgmr.msra.gmra.mxu1 %vm153_vm3, %v1237_v40 }
0x2077   :  { %1778 = vmatpush3.bf16.msra.mxu1 %v2198_v9  ;;  %1781 = vmatprep.mubr.msk.bf16.mxu1 %vm1936_vm1, %v1935_v1 }
0x2078   :  { %1779 = vmatprep.subr.bf16.mxu1 %v1935_v1 }
0x207b   :  { %1780 = vmatpush3.bf16.msra.mxu1 %v2206_v14 }
0x2136   :  { %v1275_v42 = vpop.f32.mrf.mxu1 }
0x2137   :  { %v1276_v43 = vadd.f32 %v1275_v42, %v863_v41 }
0x2138   :  { %v1767_v44 = vpop.f32.mrf.mxu1 }
0x2139   :  { %1911 = vtanh.f32 %v1276_v43  ;;  %v1564_v9 = vmul.f32 -1.442695, %v1276_v43  ;;  %v1569_v44 = vld [vmem:[#allocation3] ss:$0 sm:$0xff] }
0x213a   :  { %v1278_v45 = vpop.f32.mrf.mxu1 }
0x213b   :  { %1913 = vpow2.f32 %v1564_v9 }
0x213c   :  { %v1768_v36 = vpop.f32.mrf.mxu1 }
0x2146   :  { %v1912_v46 = vpop.eup %1911 }
0x2147   :  { %1290 = vrot.lane.b32.xlu1 %v1912_v46, %s1938_s23 }
0x2148   :  { %v1914_v18 = vpop.eup %1913 }
0x2149   :  { %v1284_v47 = vadd.f32 1.0, %v1914_v18 }
0x214b   :  { %1915 = vrcp.f32 %v1284_v47 }
0x2158   :  { %v1916_v48 = vpop.eup %1915 }
0x2159   :  { %v1288_v31 = vmul.f32 %v1916_v48, %v1227_v32 }
0x21b9   :  { %v1291_v49 = vpop.permute.xlu1 %1290 }
0x21ba   :  { %v1293_v14 = vmul.f32 %v1916_v48, %v1291_v49 }
0x21bc   :  { %1295 = vrot.lane.b32.xlu0 %v1293_v14, %s1939_s3 }
0x222e   :  { %v1296_v51 = vpop.permute.xlu0 %1295 }
0x222f   :  { %v1298_v52 = vadd.f32 %v1296_v51, %v1288_v31 }
0x2231   :  { %1917 = vtanh.f32 %v1298_v52 }
0x223e   :  { %v1918_v2 = vpop.eup %1917 }
0x223f   :  { %1301 = vrot.lane.b32.xlu1 %v1918_v2, %s1938_s23 }
0x22b1   :  { %v1302_v53 = vpop.permute.xlu1 %1301 }
0x22b2   :  { %v1304_v54 = vmul.f32 %v1916_v48, %v1302_v53 }
0x22b4   :  { %v1305_v55 = vpack.c.bf16 %v1304_v54, %v1304_v54 }
0x22b6   :  { %1307 = vrot.lane.b32.xlu0 %v1305_v55, %s1939_s3 }
0x2328   :  { %v1308_v56 = vpop.permute.xlu0 %1307 }
0x2329   :  { %1774 = vmatmul.mubr.msk.bf16.vlgmr.msra.gmra.mxu0 %vm153_vm3, %v1308_v56 }
0x232a   :  { %1789 = vmatprep.mubr.msk.bf16.mxu0 %vm1936_vm1, %v1935_v1  ;;  %1786 = vmatpush3.bf16.msra.mxu0 %v1805_v34 }
0x232b   :  { %1787 = vmatprep.subr.bf16.mxu0 %v1935_v1 }
0x232e   :  { %1788 = vmatpush3.bf16.msra.mxu0 %v1806_v35 }
0x23e9   :  { %v1346_v28 = vpop.f32.mrf.mxu0 }
0x23ea   :  { %v1347_v58 = vadd.f32 %v1346_v28, %v868_v33 }
0x23eb   :  { %v1775_v60 = vpop.f32.mrf.mxu0 }
0x23ec   :  { %1919 = vtanh.f32 %v1347_v58  ;;  %v1566_v0 = vmul.f32 -1.442695, %v1347_v58 }
0x23ed   :  { %v1349_v61 = vpop.f32.mrf.mxu0 }
0x23ee   :  { %1921 = vpow2.f32 %v1566_v0 }
0x23ef   :  { %v1776_v17 = vpop.f32.mrf.mxu0 }
0x23f9   :  { %v1920_v63 = vpop.eup %1919 }
0x23fa   :  { %1361 = vrot.lane.b32.xlu1 %v1920_v63, %s1938_s23 }
0x23fb   :  { %v1922_v59 = vpop.eup %1921 }
0x23fc   :  { %v1355_v7 = vadd.f32 1.0, %v1922_v59 }
0x23fe   :  { %1923 = vrcp.f32 %v1355_v7 }
0x240b   :  { %v1924_v57 = vpop.eup %1923 }
0x240c   :  { %v1359_v29 = vmul.f32 %v1924_v57, %v1298_v52 }
0x246c   :  { %v1362_v62 = vpop.permute.xlu1 %1361 }
0x246d   :  { %v1364_v50 = vmul.f32 %v1924_v57, %v1362_v62 }
0x246f   :  { %1366 = vrot.lane.b32.xlu0 %v1364_v50, %s1939_s3 }
0x24e1   :  { %v1367_v8 = vpop.permute.xlu0 %1366 }
0x24e2   :  { %v1369_v4 = vadd.f32 %v1367_v8, %v1359_v29 }
0x24e4   :  { %1925 = vtanh.f32 %v1369_v4 }
0x24f1   :  { %v1926_v15 = vpop.eup %1925 }
0x24f2   :  { %1372 = vrot.lane.b32.xlu1 %v1926_v15, %s1938_s23 }
0x2564   :  { %v1373_v16 = vpop.permute.xlu1 %1372 }
0x2565   :  { %v1375_v19 = vmul.f32 %v1924_v57, %v1373_v16 }
0x2567   :  { %v1376_v20 = vpack.c.bf16 %v1375_v19, %v1375_v19 }
0x2569   :  { %1378 = vrot.lane.b32.xlu0 %v1376_v20, %s1939_s3 }
0x25db   :  { %v1379_v21 = vpop.permute.xlu0 %1378 }
0x25dc   :  { %1782 = vmatmul.mubr.msk.bf16.vlgmr.msra.gmra.mxu1 %vm153_vm3, %v1379_v21 }
0x269c   :  { %v1417_v22 = vpop.f32.mrf.mxu1 }
0x269d   :  { %v1418_v12 = vadd.f32 %v1417_v22, %v871_v11 }
0x269e   :  { %v1783_v24 = vpop.f32.mrf.mxu1 }
0x269f   :  { %1927 = vtanh.f32 %v1418_v12  ;;  %v1568_v13 = vmul.f32 -1.442695, %v1418_v12 }
0x26a0   :  { %v1420_v25 = vpop.f32.mrf.mxu1 }
0x26a1   :  { %1929 = vpow2.f32 %v1568_v13 }
0x26a2   :  { %v1784_v3 = vpop.f32.mrf.mxu1 }
0x26ac   :  { %v1928_v26 = vpop.eup %1927 }
0x26ad   :  { %1432 = vrot.lane.b32.xlu1 %v1928_v26, %s1938_s23 }
0x26ae   :  { %v1930_v37 = vpop.eup %1929 }
0x26af   :  { %v1426_v5 = vadd.f32 1.0, %v1930_v37 }
0x26b1   :  { %1931 = vrcp.f32 %v1426_v5 }
0x26be   :  { %v1932_v27 = vpop.eup %1931 }
0x26bf   :  { %v1430_v23 = vmul.f32 %v1932_v27, %v1369_v4 }
0x271f   :  { %v1433_v10 = vpop.permute.xlu1 %1432 }
0x2720   :  { %v1435_v30 = vmul.f32 %v1932_v27, %v1433_v10 }
0x2722   :  { %1437 = vrot.lane.b32.xlu0 %v1435_v30, %s1939_s3 }
0x2794   :  { %v1438_v6 = vpop.permute.xlu0 %1437 }
0x2795   :  { %v1440_v32 = vadd.f32 %v1438_v6, %v1430_v23 }
0x2797   :  { %1933 = vtanh.f32 %v1440_v32 }
0x27a4   :  { %v1934_v38 = vpop.eup %1933 }
0x27a5   :  { %1443 = vrot.lane.b32.xlu1 %v1934_v38, %s1938_s23 }
0x2817   :  { %v1444_v40 = vpop.permute.xlu1 %1443 }
0x2818   :  { %v1446_v41 = vmul.f32 %v1932_v27, %v1444_v40 }
0x281a   :  { %v1447_v42 = vpack.c.bf16 %v1446_v41, %v1446_v41 }
0x281c   :  { %1460 = vrot.lane.b32.xlu0 %v1447_v42, %s1939_s3 }
0x288e   :  { %v1461_v43 = vpop.permute.xlu0 %1460 }
0x288f   :  { %1790 = vmatmul.mubr.msk.bf16.vlgmr.msra.gmra.mxu0 %vm153_vm3, %v1461_v43 }
0x294f   :  { %v1511_v45 = vpop.f32.mrf.mxu0 }
0x2950   :  { %v1512_v1 = vadd.f32 %v1569_v44, %v1511_v45 }
0x2951   :  { %v1791_v36 = vpop.f32.mrf.mxu0 }
0x2952   :  { %1518 = vst.msk [vmem:[%s2369_s9] sm:$0xff] %vm1517_vm4, %v1512_v1 }
0x2953   :  { %v1514_v46 = vpop.f32.mrf.mxu0 }
0x2955   :  { %v1792_v9 = vpop.f32.mrf.mxu0 }

</bundles_post_ra>
